<compile_context>
chip_gen: v5e
topology: v5e:2x2
jax: 0.10.0
libtpu: 0.0.40
codegen_flags: <defaults>
</compile_context>

<pallas_src>
import jax
import jax.numpy as jnp
from jax.experimental import pallas as pl
from jax.experimental.pallas import tpu as pltpu

# Full-precision f32 matmuls for both the kernel trace and the XLA reference so the
# exact-counts aggregation stays within 1e-4 of the reference.
jax.config.update("jax_default_matmul_precision", "highest")

_HIGHEST = jax.lax.Precision.HIGHEST


def _graph_meter_kernel(a_ref,      # VMEM (TILE_K, TILE_N) agg_dtype: A^T raw-count tile
                        xk_ref,     # VMEM (t_in,  TILE_K)  f32: x^T contraction slice
                        xtile_ref,  # VMEM (t_in,  TILE_N)  f32: x^T of this node tile (lin_r operand)
                        invd_ref,   # VMEM (1,     TILE_N)  f32: 1/deg for this node tile
                        wlr_ref,    # VMEM (t_in,  2*t_in)  f32: [Wl | Wr]
                        bl_ref,     # VMEM (t_in,  1)       f32: SAGE lin_l bias
                        wih_ref,    # VMEM (4, 1)           f32: LSTM W_ih (g-gate row pre-scaled by 2)
                        whh_ref,    # VMEM (4, 1)           f32: LSTM W_hh (g-gate row pre-scaled by 2)
                        bg_ref,     # VMEM (4, 1)           f32: LSTM b_ih + b_hh (g-gate row pre-scaled by 2)
                        wlin_ref,   # VMEM (t_out, t_in)    f32: output Linear weight
                        blin_ref,   # VMEM (t_out, 1)       f32: output Linear bias
                        out_ref,    # VMEM (t_out, TILE_N)  f32: transposed output block (lane-dense)
                        acc_ref):   # VMEM (t_in,  TILE_N)  f32 scratch: aggregation accumulator
    k = pl.program_id(1)

    @pl.when(k == 0)
    def _init():
        acc_ref[...] = jnp.zeros_like(acc_ref)

    # ---- mean-aggregation numerator, lane-major: (counts @ x)^T = x^T @ counts^T ----
    # Counts are streamed narrow (bf16/int8/fp8) and upcast to f32 here (VPU, hidden
    # under the HBM-bound DMA); accumulation is exact f32.
    acc_ref[...] += jnp.dot(xk_ref[...], a_ref[...].astype(jnp.float32),
                            preferred_element_type=jnp.float32,
                            precision=_HIGHEST)

    @pl.when(k == pl.num_programs(1) - 1)
    def _epilogue():
        t_in = wlr_ref.shape[0]
        tile = out_ref.shape[-1]

        agg = acc_ref[...] * invd_ref[...]                    # exact 1/deg normalization

        # Fused SAGE projections: x_conv^T = [Wl | Wr] @ [agg^T ; x^T] + bl
        stacked = jnp.concatenate([agg, xtile_ref[...]], axis=0)       # (2*t_in, TILE_N)
        xc = jnp.dot(wlr_ref[...], stacked,
                     preferred_element_type=jnp.float32,
                     precision=_HIGHEST) + bl_ref[...]                  # (t_in, TILE_N)

        # LSTM(input=1, hidden=1): all 4 gate pre-activations as one (4, TILE_N) slab,
        # single sigmoid per slab; tanh recovered via tanh(z) = 2*sigmoid(2z) - 1
        # (the factor 2 on the g gate is folded into wih/whh/bg by the wrapper).
        w_ih = wih_ref[...]
        w_hh = whh_ref[...]
        b_g = bg_ref[...]
        h = jnp.zeros((1, tile), jnp.float32)
        c = jnp.zeros((1, tile), jnp.float32)
        hs = []
        for t in range(t_in):                                  # static unroll; t_in is small
            x_t = xc[t:t + 1, :]                               # (1, TILE_N), lane-dense
            pre = w_ih * x_t + w_hh * h + b_g                  # (4, TILE_N)
            s = jax.nn.sigmoid(pre)
            i_g = s[0:1, :]
            f_g = s[1:2, :]
            g_g = 2.0 * s[2:3, :] - 1.0                        # == tanh of the original pre-act
            o_g = s[3:4, :]
            c = f_g * c + i_g * g_g
            h = o_g * (2.0 * jax.nn.sigmoid(2.0 * c) - 1.0)    # o * tanh(c)
            hs.append(h)
        hseq = jnp.concatenate(hs, axis=0)                     # (t_in, TILE_N), register-held

        # Output Linear(t_in, t_out), one MXU dot, lane-dense unmasked stores.
        out_ref[...] = (jnp.dot(wlin_ref[...], hseq,
                                preferred_element_type=jnp.float32,
                                precision=_HIGHEST)
                        + blin_ref[...])


def _round_up(v, m):
    return ((v + m - 1) // m) * m


def _vmem_budget_bytes():
    """Per-generation scoped-VMEM budget for the kernel's double-buffered blocks."""
    try:
        info = pltpu.get_tpu_info()
        cap = int(getattr(info, "vmem_capacity_bytes", 64 << 20))
    except Exception:   # query unavailable -> conservative default (covers v7x 64 MiB)
        cap = 64 << 20
    return max(16 << 20, min(int(cap * 0.6), 96 << 20))


def graph_meter_forward(x, edge_index, params, *, t_out,
                        tile_n=512, tile_k=2048, agg_dtype=jnp.bfloat16):
    """x: (N, t_in) f32, edge_index: (2, E) int32 [src; dst] -> (N, t_out) f32.

    agg_dtype controls ONLY the storage/stream dtype of the unnormalized adjacency
    COUNTS (the dominant HBM stream); they are upcast to f32 in-kernel before the MXU
    and the 1/deg normalization is applied afterwards in f32, so the result is exact
    as long as the counts are representable:
      bf16 (default, all generations): exact for counts <= 256, 2x fewer HBM bytes
      int8 (v5e/v6e-friendly):         exact for counts <= 127, 4x fewer HBM bytes
      float8_e4m3fn (v7x-friendly):    exact for counts <= 8,   4x fewer HBM bytes
    Unrepresentable counts automatically fall back to a wider dtype.
    """
    n, t_in = x.shape
    src, dst = edge_index[0], edge_index[1]

    # Glue (XLA): dense neighbor-count matrix == SAGEConv mean-aggregation numerator.
    # TODO(synk): for large sparse graphs replace the dense O(N^2) adjacency with a
    # CSR/neighbor-offset table (PrefetchScalarGridSpec scalar prefetch) + gather.
    counts = jnp.zeros((n, n), jnp.float32).at[dst, src].add(1.0)
    deg = counts.sum(axis=1)                                   # in-degree per dst node
    inv_deg = 1.0 / jnp.maximum(deg, 1.0)                      # isolated nodes aggregate to 0

    # Exactness guard on the narrow count dtype (concrete wrapper values; glue only).
    agg_dtype = jnp.dtype(agg_dtype)
    try:
        max_count = float(counts.max()) if n > 0 else 0.0
    except Exception:
        max_count = None
    if max_count is not None:
        if jnp.issubdtype(agg_dtype, jnp.integer):
            if max_count > float(jnp.iinfo(agg_dtype).max):
                agg_dtype = jnp.dtype(jnp.bfloat16)
        elif agg_dtype.itemsize == 1 and max_count > 8.0:      # fp8 counts
            agg_dtype = jnp.dtype(jnp.bfloat16)
        if agg_dtype == jnp.dtype(jnp.bfloat16) and max_count > 256.0:
            agg_dtype = jnp.dtype(jnp.float32)
    itemsize = agg_dtype.itemsize

    # ---- tile selection under a dtype/generation-aware VMEM budget -------------------
    budget = _vmem_budget_bytes()
    n128 = _round_up(max(n, 1), 128)
    tile_n = min(max(128, (int(tile_n) // 128) * 128), n128)
    n_pad = _round_up(n, tile_n)
    tile_k = min(max(128, (int(tile_k) // 128) * 128), n_pad)
    while n_pad % tile_k:
        tile_k -= 128

    def vmem_est(tk, tn):
        return (2 * tk * tn * itemsize       # A^T counts tile, double buffered
                + 2 * t_in * tk * 4          # x^T contraction slice, double buffered
                + 2 * t_in * tn * 4          # x^T node tile, double buffered
                + 2 * tn * 4                 # 1/deg tile
                + 2 * t_out * tn * 4         # output tile
                + t_in * tn * 4              # accumulator scratch
                + (256 << 10))               # weights + slack

    while vmem_est(tile_k, tile_n) > budget and tile_k > 128:
        tile_k -= 128
        while n_pad % tile_k:
            tile_k -= 128
    while vmem_est(tile_k, tile_n) > budget and tile_n > 128:
        tile_n -= 128
        n_pad = _round_up(n, tile_n)
        tile_k = min(tile_k, n_pad)
        while n_pad % tile_k:
            tile_k -= 128

    grid = (n_pad // tile_n, n_pad // tile_k)

    # ---- lane-major operands (graph nodes live on the 128-wide lane axis) ------------
    a_t = jnp.zeros((n_pad, n_pad), jnp.float32).at[:n, :n].set(counts.T)
    a_t = a_t.astype(agg_dtype)                                # raw counts, narrow dtype
    x_t = jnp.zeros((t_in, n_pad), jnp.float32).at[:, :n].set(x.T.astype(jnp.float32))
    invd = jnp.zeros((1, n_pad), jnp.float32).at[0, :n].set(inv_deg)

    # Fused SAGE projection weight [Wl | Wr]; torch weights are [out, in].
    wlr = jnp.concatenate([params["wl"], params["wr"]], axis=1).astype(jnp.float32)
    bl = params["bl"][:, None].astype(jnp.float32)

    # LSTM(1,1) parameters in torch gate order (i, f, g, o); the tanh gate (g) row is
    # pre-scaled by 2 so the kernel can use tanh(z) = 2*sigmoid(2z) - 1 on one slab.
    gate_scale = jnp.array([1.0, 1.0, 2.0, 1.0], jnp.float32)[:, None]
    w_ih = params["w_ih"].astype(jnp.float32) * gate_scale                      # (4, 1)
    w_hh = params["w_hh"].astype(jnp.float32) * gate_scale                      # (4, 1)
    b_g = (params["b_ih"] + params["b_hh"]).astype(jnp.float32)[:, None] * gate_scale

    wlin = params["wlin"].astype(jnp.float32)
    blin = params["blin"][:, None].astype(jnp.float32)

    grid_spec = pltpu.PrefetchScalarGridSpec(
        num_scalar_prefetch=0,
        grid=grid,
        in_specs=[
            pl.BlockSpec((tile_k, tile_n), lambda i, k: (k, i)),    # A^T counts tile
            pl.BlockSpec((t_in, tile_k), lambda i, k: (0, k)),      # x^T contraction slice
            pl.BlockSpec((t_in, tile_n), lambda i, k: (0, i)),      # x^T node tile
            pl.BlockSpec((1, tile_n), lambda i, k: (0, i)),         # 1/deg tile
            pl.BlockSpec((t_in, 2 * t_in), lambda i, k: (0, 0)),    # [Wl | Wr]
            pl.BlockSpec((t_in, 1), lambda i, k: (0, 0)),           # bl
            pl.BlockSpec((4, 1), lambda i, k: (0, 0)),              # LSTM W_ih
            pl.BlockSpec((4, 1), lambda i, k: (0, 0)),              # LSTM W_hh
            pl.BlockSpec((4, 1), lambda i, k: (0, 0)),              # LSTM bias
            pl.BlockSpec((t_out, t_in), lambda i, k: (0, 0)),       # Wlin
            pl.BlockSpec((t_out, 1), lambda i, k: (0, 0)),          # blin
        ],
        out_specs=pl.BlockSpec((t_out, tile_n), lambda i, k: (0, i)),
        scratch_shapes=[pltpu.VMEM((t_in, tile_n), jnp.float32)],   # aggregation accumulator
    )

    out_t = pl.pallas_call(
        _graph_meter_kernel,
        out_shape=jax.ShapeDtypeStruct((t_out, n_pad), jnp.float32),
        grid_spec=grid_spec,
        compiler_params=pltpu.CompilerParams(
            dimension_semantics=("parallel", "arbitrary"),  # node tiles across TCs, K sequential
            vmem_limit_bytes=budget),
    )(a_t, x_t, x_t, invd, wlr, bl, w_ih, w_hh, b_g, wlin, blin)

    return out_t[:, :n].T                                      # back to node-major (N, t_out)


def graph_meter_reference(x, edge_index, params, *, t_in):
    """Pure-JAX reference mirroring the PyTorch forward semantics."""
    n = x.shape[0]
    src, dst = edge_index[0], edge_index[1]
    counts = jnp.zeros((n, n), jnp.float32).at[dst, src].add(1.0)
    deg = counts.sum(axis=1, keepdims=True)
    a = counts / jnp.maximum(deg, 1.0)

    x_conv = (a @ x) @ params["wl"].T + params["bl"] + x @ params["wr"].T

    w_ih = params["w_ih"][:, 0]
    w_hh = params["w_hh"][:, 0]
    b = params["b_ih"] + params["b_hh"]
    h = jnp.zeros((n,), jnp.float32)
    c = jnp.zeros((n,), jnp.float32)
    outs = []
    for t in range(t_in):
        xt = x_conv[:, t]
        i = jax.nn.sigmoid(w_ih[0] * xt + w_hh[0] * h + b[0])
        f = jax.nn.sigmoid(w_ih[1] * xt + w_hh[1] * h + b[1])
        g = jnp.tanh(w_ih[2] * xt + w_hh[2] * h + b[2])
        o = jax.nn.sigmoid(w_ih[3] * xt + w_hh[3] * h + b[3])
        c = f * c + i * g
        h = o * jnp.tanh(c)
        outs.append(h)
    hseq = jnp.stack(outs, axis=1)              # (N, t_in)
    return hseq @ params["wlin"].T + params["blin"]


if __name__ == "__main__":
    key = jax.random.PRNGKey(0)
    t_in, t_out = 8, 4
    keys = jax.random.split(key, 14)

    # Deterministic synthetic parameters (shapes follow the torch module).
    params = {
        "wl":   0.3 * jax.random.normal(keys[1], (t_in, t_in), jnp.float32),   # SAGE lin_l
        "bl":   0.1 * jax.random.normal(keys[2], (t_in,), jnp.float32),
        "wr":   0.3 * jax.random.normal(keys[3], (t_in, t_in), jnp.float32),   # SAGE lin_r (no bias)
        "w_ih": 0.5 * jax.random.normal(keys[4], (4, 1), jnp.float32),         # LSTM weight_ih_l0
        "w_hh": 0.5 * jax.random.normal(keys[5], (4, 1), jnp.float32),         # LSTM weight_hh_l0
        "b_ih": 0.1 * jax.random.normal(keys[6], (4,), jnp.float32),
        "b_hh": 0.1 * jax.random.normal(keys[7], (4,), jnp.float32),
        "wlin": 0.3 * jax.random.normal(keys[8], (t_out, t_in), jnp.float32),  # Linear(t_in, t_out)
        "blin": 0.1 * jax.random.normal(keys[9], (t_out,), jnp.float32),
    }

    # ---- Test 1: small module-sized graph (batch=2, width=4 nodes), default tiles ----
    batch, width = 2, 4
    n1 = batch * width
    x1 = jax.random.normal(keys[0], (n1, t_in), jnp.float32)
    edges = []
    for b in range(batch):
        for i in range(width):
            u = b * width + i
            v = b * width + (i + 1) % width
            edges.append((u, v))
            edges.append((v, u))
    edge_index1 = jnp.array(edges, jnp.int32).T                    # (2, 16)

    out1 = graph_meter_forward(x1, edge_index1, params, t_out=t_out)
    out1 = jax.block_until_ready(out1)
    ref1 = graph_meter_reference(x1, edge_index1, params, t_in=t_in)
    assert out1.shape == (n1, t_out)
    assert jnp.allclose(out1, ref1, atol=1e-4, rtol=1e-4), \
        float(jnp.abs(out1 - ref1).max())

    # ---- Test 2: larger random graph, default tiles (single 384-wide block) ----------
    n2, e2 = 300, 900                                              # n_pad=384
    x2 = jax.random.normal(keys[10], (n2, t_in), jnp.float32)
    src2 = jax.random.randint(keys[11], (e2,), 0, n2, dtype=jnp.int32)
    dst2 = jax.random.randint(keys[12], (e2,), 0, n2, dtype=jnp.int32)
    edge_index2 = jnp.stack([src2, dst2])
    ref2 = graph_meter_reference(x2, edge_index2, params, t_in=t_in)

    out2a = graph_meter_forward(x2, edge_index2, params, t_out=t_out)
    out2a = jax.block_until_ready(out2a)
    assert out2a.shape == (n2, t_out)
    assert jnp.allclose(out2a, ref2, atol=1e-4, rtol=1e-4), \
        float(jnp.abs(out2a - ref2).max())

    # ---- Test 3: same graph, forced small tiles -> 3x3 grid (exercises K-axis
    # accumulation, pl.when init/epilogue gating, and lane padding) --------------------
    out2b = graph_meter_forward(x2, edge_index2, params, t_out=t_out,
                                tile_n=128, tile_k=128)
    out2b = jax.block_until_ready(out2b)
    assert out2b.shape == (n2, t_out)
    assert jnp.allclose(out2b, ref2, atol=1e-4, rtol=1e-4), \
        float(jnp.abs(out2b - ref2).max())

    print("KERNEL_OK")
</pallas_src>

<mosaic_0001>
module attributes {stable_mosaic.version = 11 : i64} {
  func.func @_graph_meter_kernel(%arg0: i32, %arg1: i32, %arg2: memref<128x128xbf16, #tpu.memory_space<vmem>>, %arg3: memref<8x128xf32, #tpu.memory_space<vmem>>, %arg4: memref<8x128xf32, #tpu.memory_space<vmem>>, %arg5: memref<1x128xf32, #tpu.memory_space<vmem>>, %arg6: memref<8x16xf32, #tpu.memory_space<vmem>>, %arg7: memref<8x1xf32, #tpu.memory_space<vmem>>, %arg8: memref<4x1xf32, #tpu.memory_space<vmem>>, %arg9: memref<4x1xf32, #tpu.memory_space<vmem>>, %arg10: memref<4x1xf32, #tpu.memory_space<vmem>>, %arg11: memref<4x8xf32, #tpu.memory_space<vmem>>, %arg12: memref<4x1xf32, #tpu.memory_space<vmem>>, %arg13: memref<4x128xf32, #tpu.memory_space<vmem>>, %arg14: memref<8x128xf32, #tpu.memory_space<vmem>>) attributes {dimension_semantics = [#tpu.dimension_semantics<parallel>, #tpu.dimension_semantics<arbitrary>], iteration_bounds = array<i64: 1, 1>, scalar_prefetch = 0 : i64, scratch_operands = 1 : i64, tpu.core_type = #tpu.core_type<tc>, window_params = [{transform_indices = @transform_0, window_bounds = array<i64: 128, 128>}, {transform_indices = @transform_1, window_bounds = array<i64: 8, 128>}, {transform_indices = @transform_2, window_bounds = array<i64: 8, 128>}, {transform_indices = @transform_3, window_bounds = array<i64: 1, 128>}, {pipeline_mode = #tpu.pipeline_mode<synchronous>, transform_indices = @transform_4, window_bounds = array<i64: 8, 16>}, {pipeline_mode = #tpu.pipeline_mode<synchronous>, transform_indices = @transform_5, window_bounds = array<i64: 8, 1>}, {pipeline_mode = #tpu.pipeline_mode<synchronous>, transform_indices = @transform_6, window_bounds = array<i64: 4, 1>}, {pipeline_mode = #tpu.pipeline_mode<synchronous>, transform_indices = @transform_7, window_bounds = array<i64: 4, 1>}, {pipeline_mode = #tpu.pipeline_mode<synchronous>, transform_indices = @transform_8, window_bounds = array<i64: 4, 1>}, {pipeline_mode = #tpu.pipeline_mode<synchronous>, transform_indices = @transform_9, window_bounds = array<i64: 4, 8>}, {pipeline_mode = #tpu.pipeline_mode<synchronous>, transform_indices = @transform_10, window_bounds = array<i64: 4, 1>}, {transform_indices = @transform_11, window_bounds = array<i64: 4, 128>}]} {
    %c0_i32 = arith.constant 0 : i32
    %0 = arith.cmpi eq, %arg1, %c0_i32 : i32
    %1 = arith.extui %0 : i1 to i32
    %c0_i32_0 = arith.constant 0 : i32
    %2 = arith.cmpi ne, %1, %c0_i32_0 : i32
    scf.if %2 {
      %cst_10 = arith.constant 0.000000e+00 : f32
      %13 = vector.broadcast %cst_10 : f32 to vector<8x128xf32>
      %c0_11 = arith.constant 0 : index
      %c0_12 = arith.constant 0 : index
      %14 = vector.load %arg14[%c0_11, %c0_12] : memref<8x128xf32, #tpu.memory_space<vmem>>, vector<8x128xf32>
      tpu.vector_store %arg14[%c0_11, %c0_12], %13 {strides = array<i32>} : memref<8x128xf32, #tpu.memory_space<vmem>>, vector<8x128xf32>,
    } else {
    }
    %c0 = arith.constant 0 : index
    %c0_1 = arith.constant 0 : index
    %3 = vector.load %arg14[%c0, %c0_1] : memref<8x128xf32, #tpu.memory_space<vmem>>, vector<8x128xf32>
    %c0_2 = arith.constant 0 : index
    %c0_3 = arith.constant 0 : index
    %4 = vector.load %arg3[%c0_2, %c0_3] : memref<8x128xf32, #tpu.memory_space<vmem>>, vector<8x128xf32>
    %c0_4 = arith.constant 0 : index
    %c0_5 = arith.constant 0 : index
    %5 = vector.load %arg2[%c0_4, %c0_5] : memref<128x128xbf16, #tpu.memory_space<vmem>>, vector<128x128xbf16>
    %6 = arith.extf %5 : vector<128x128xbf16> to vector<128x128xf32>
    %cst = arith.constant dense<0.000000e+00> : vector<8x128xf32>
    %7 = tpu.matmul %4, %6, %cst {dimension_numbers = #tpu.dot_dimension_numbers<[1], [0], [0], [1], [0, 0, 1, 1], [], []>, precision = #tpu.contract_precision<fp32>} : vector<8x128xf32>, vector<128x128xf32>, vector<8x128xf32> -> vector<8x128xf32>
    %8 = arith.addf %3, %7 : vector<8x128xf32>
    %c0_6 = arith.constant 0 : index
    %c0_7 = arith.constant 0 : index
    %9 = vector.load %arg14[%c0_6, %c0_7] : memref<8x128xf32, #tpu.memory_space<vmem>>, vector<8x128xf32>
    tpu.vector_store %arg14[%c0_6, %c0_7], %8 {strides = array<i32>} : memref<8x128xf32, #tpu.memory_space<vmem>>, vector<8x128xf32>,
    %c0_i32_8 = arith.constant 0 : i32
    %10 = arith.cmpi eq, %arg1, %c0_i32_8 : i32
    %11 = arith.extui %10 : i1 to i32
    %c0_i32_9 = arith.constant 0 : i32
    %12 = arith.cmpi ne, %11, %c0_i32_9 : i32
    scf.if %12 {
      %c0_10 = arith.constant 0 : index
      %c0_11 = arith.constant 0 : index
      %13 = vector.load %arg14[%c0_10, %c0_11] : memref<8x128xf32, #tpu.memory_space<vmem>>, vector<8x128xf32>
      %c0_12 = arith.constant 0 : index
      %c0_13 = arith.constant 0 : index
      %14 = vector.load %arg5[%c0_12, %c0_13] : memref<1x128xf32, #tpu.memory_space<vmem>>, vector<1x128xf32>
      %15 = vector.broadcast %14 : vector<1x128xf32> to vector<8x128xf32>
      %16 = arith.mulf %13, %15 : vector<8x128xf32>
      %c0_14 = arith.constant 0 : index
      %c0_15 = arith.constant 0 : index
      %17 = vector.load %arg4[%c0_14, %c0_15] : memref<8x128xf32, #tpu.memory_space<vmem>>, vector<8x128xf32>
      %18 = tpu.concatenate %16, %17 in 0 : vector<8x128xf32>, vector<8x128xf32> -> vector<16x128xf32>
      %c0_16 = arith.constant 0 : index
      %c0_17 = arith.constant 0 : index
      %19 = vector.load %arg6[%c0_16, %c0_17] : memref<8x16xf32, #tpu.memory_space<vmem>>, vector<8x16xf32>
      %cst_18 = arith.constant dense<0.000000e+00> : vector<8x128xf32>
      %20 = tpu.matmul %19, %18, %cst_18 {dimension_numbers = #tpu.dot_dimension_numbers<[1], [0], [0], [1], [0, 0, 1, 1], [], []>, precision = #tpu.contract_precision<fp32>} : vector<8x16xf32>, vector<16x128xf32>, vector<8x128xf32> -> vector<8x128xf32>
      %c0_19 = arith.constant 0 : index
      %c0_20 = arith.constant 0 : index
      %21 = vector.load %arg7[%c0_19, %c0_20] : memref<8x1xf32, #tpu.memory_space<vmem>>, vector<8x1xf32>
      %22 = vector.broadcast %21 : vector<8x1xf32> to vector<8x128xf32>
      %23 = arith.addf %20, %22 : vector<8x128xf32>
      %c0_21 = arith.constant 0 : index
      %c0_22 = arith.constant 0 : index
      %24 = vector.load %arg8[%c0_21, %c0_22] : memref<4x1xf32, #tpu.memory_space<vmem>>, vector<4x1xf32>
      %c0_23 = arith.constant 0 : index
      %c0_24 = arith.constant 0 : index
      %25 = vector.load %arg9[%c0_23, %c0_24] : memref<4x1xf32, #tpu.memory_space<vmem>>, vector<4x1xf32>
      %c0_25 = arith.constant 0 : index
      %c0_26 = arith.constant 0 : index
      %26 = vector.load %arg10[%c0_25, %c0_26] : memref<4x1xf32, #tpu.memory_space<vmem>>, vector<4x1xf32>
      %cst_27 = arith.constant 0.000000e+00 : f32
      %27 = vector.broadcast %cst_27 : f32 to vector<1x128xf32>
      %cst_28 = arith.constant 0.000000e+00 : f32
      %28 = vector.broadcast %cst_28 : f32 to vector<1x128xf32>
      %29 = vector.extract_strided_slice %23 {offsets = [0, 0], sizes = [1, 128], strides = [1, 1]} : vector<8x128xf32> to vector<1x128xf32>
      %30 = vector.broadcast %24 : vector<4x1xf32> to vector<4x128xf32>
      %31 = vector.broadcast %29 : vector<1x128xf32> to vector<4x128xf32>
      %32 = arith.mulf %30, %31 : vector<4x128xf32>
      %33 = vector.broadcast %25 : vector<4x1xf32> to vector<4x128xf32>
      %34 = vector.broadcast %27 : vector<1x128xf32> to vector<4x128xf32>
      %35 = arith.mulf %33, %34 : vector<4x128xf32>
      %36 = arith.addf %32, %35 : vector<4x128xf32>
      %37 = vector.broadcast %26 : vector<4x1xf32> to vector<4x128xf32>
      %38 = arith.addf %36, %37 : vector<4x128xf32>
      %39 = arith.negf %38 : vector<4x128xf32>
      %40 = math.exp %39 : vector<4x128xf32>
      %cst_29 = arith.constant 1.000000e+00 : f32
      %41 = vector.broadcast %cst_29 : f32 to vector<4x128xf32>
      %42 = arith.addf %41, %40 : vector<4x128xf32>
      %43 = arith.divf %41, %42 : vector<4x128xf32>
      %44 = vector.extract_strided_slice %43 {offsets = [0, 0], sizes = [1, 128], strides = [1, 1]} : vector<4x128xf32> to vector<1x128xf32>
      %45 = vector.extract_strided_slice %43 {offsets = [1, 0], sizes = [1, 128], strides = [1, 1]} : vector<4x128xf32> to vector<1x128xf32>
      %46 = vector.extract_strided_slice %43 {offsets = [2, 0], sizes = [1, 128], strides = [1, 1]} : vector<4x128xf32> to vector<1x128xf32>
      %cst_30 = arith.constant 2.000000e+00 : f32
      %47 = vector.broadcast %cst_30 : f32 to vector<1x128xf32>
      %48 = arith.mulf %47, %46 : vector<1x128xf32>
      %cst_31 = arith.constant 1.000000e+00 : f32
      %49 = vector.broadcast %cst_31 : f32 to vector<1x128xf32>
      %50 = arith.subf %48, %49 : vector<1x128xf32>
      %51 = vector.extract_strided_slice %43 {offsets = [3, 0], sizes = [1, 128], strides = [1, 1]} : vector<4x128xf32> to vector<1x128xf32>
      %52 = arith.mulf %45, %28 : vector<1x128xf32>
      %53 = arith.mulf %44, %50 : vector<1x128xf32>
      %54 = arith.addf %52, %53 : vector<1x128xf32>
      %cst_32 = arith.constant 2.000000e+00 : f32
      %55 = vector.broadcast %cst_32 : f32 to vector<1x128xf32>
      %56 = arith.mulf %55, %54 : vector<1x128xf32>
      %57 = arith.negf %56 : vector<1x128xf32>
      %58 = math.exp %57 : vector<1x128xf32>
      %cst_33 = arith.constant 1.000000e+00 : f32
      %59 = vector.broadcast %cst_33 : f32 to vector<1x128xf32>
      %60 = arith.addf %59, %58 : vector<1x128xf32>
      %61 = arith.divf %59, %60 : vector<1x128xf32>
      %cst_34 = arith.constant 2.000000e+00 : f32
      %62 = vector.broadcast %cst_34 : f32 to vector<1x128xf32>
      %63 = arith.mulf %62, %61 : vector<1x128xf32>
      %cst_35 = arith.constant 1.000000e+00 : f32
      %64 = vector.broadcast %cst_35 : f32 to vector<1x128xf32>
      %65 = arith.subf %63, %64 : vector<1x128xf32>
      %66 = arith.mulf %51, %65 : vector<1x128xf32>
      %67 = vector.extract_strided_slice %23 {offsets = [1, 0], sizes = [1, 128], strides = [1, 1]} : vector<8x128xf32> to vector<1x128xf32>
      %68 = vector.broadcast %24 : vector<4x1xf32> to vector<4x128xf32>
      %69 = vector.broadcast %67 : vector<1x128xf32> to vector<4x128xf32>
      %70 = arith.mulf %68, %69 : vector<4x128xf32>
      %71 = vector.broadcast %25 : vector<4x1xf32> to vector<4x128xf32>
      %72 = vector.broadcast %66 : vector<1x128xf32> to vector<4x128xf32>
      %73 = arith.mulf %71, %72 : vector<4x128xf32>
      %74 = arith.addf %70, %73 : vector<4x128xf32>
      %75 = vector.broadcast %26 : vector<4x1xf32> to vector<4x128xf32>
      %76 = arith.addf %74, %75 : vector<4x128xf32>
      %77 = arith.negf %76 : vector<4x128xf32>
      %78 = math.exp %77 : vector<4x128xf32>
      %cst_36 = arith.constant 1.000000e+00 : f32
      %79 = vector.broadcast %cst_36 : f32 to vector<4x128xf32>
      %80 = arith.addf %79, %78 : vector<4x128xf32>
      %81 = arith.divf %79, %80 : vector<4x128xf32>
      %82 = vector.extract_strided_slice %81 {offsets = [0, 0], sizes = [1, 128], strides = [1, 1]} : vector<4x128xf32> to vector<1x128xf32>
      %83 = vector.extract_strided_slice %81 {offsets = [1, 0], sizes = [1, 128], strides = [1, 1]} : vector<4x128xf32> to vector<1x128xf32>
      %84 = vector.extract_strided_slice %81 {offsets = [2, 0], sizes = [1, 128], strides = [1, 1]} : vector<4x128xf32> to vector<1x128xf32>
      %cst_37 = arith.constant 2.000000e+00 : f32
      %85 = vector.broadcast %cst_37 : f32 to vector<1x128xf32>
      %86 = arith.mulf %85, %84 : vector<1x128xf32>
      %cst_38 = arith.constant 1.000000e+00 : f32
      %87 = vector.broadcast %cst_38 : f32 to vector<1x128xf32>
      %88 = arith.subf %86, %87 : vector<1x128xf32>
      %89 = vector.extract_strided_slice %81 {offsets = [3, 0], sizes = [1, 128], strides = [1, 1]} : vector<4x128xf32> to vector<1x128xf32>
      %90 = arith.mulf %83, %54 : vector<1x128xf32>
      %91 = arith.mulf %82, %88 : vector<1x128xf32>
      %92 = arith.addf %90, %91 : vector<1x128xf32>
      %cst_39 = arith.constant 2.000000e+00 : f32
      %93 = vector.broadcast %cst_39 : f32 to vector<1x128xf32>
      %94 = arith.mulf %93, %92 : vector<1x128xf32>
      %95 = arith.negf %94 : vector<1x128xf32>
      %96 = math.exp %95 : vector<1x128xf32>
      %cst_40 = arith.constant 1.000000e+00 : f32
      %97 = vector.broadcast %cst_40 : f32 to vector<1x128xf32>
      %98 = arith.addf %97, %96 : vector<1x128xf32>
      %99 = arith.divf %97, %98 : vector<1x128xf32>
      %cst_41 = arith.constant 2.000000e+00 : f32
      %100 = vector.broadcast %cst_41 : f32 to vector<1x128xf32>
      %101 = arith.mulf %100, %99 : vector<1x128xf32>
      %cst_42 = arith.constant 1.000000e+00 : f32
      %102 = vector.broadcast %cst_42 : f32 to vector<1x128xf32>
      %103 = arith.subf %101, %102 : vector<1x128xf32>
      %104 = arith.mulf %89, %103 : vector<1x128xf32>
      %105 = vector.extract_strided_slice %23 {offsets = [2, 0], sizes = [1, 128], strides = [1, 1]} : vector<8x128xf32> to vector<1x128xf32>
      %106 = vector.broadcast %24 : vector<4x1xf32> to vector<4x128xf32>
      %107 = vector.broadcast %105 : vector<1x128xf32> to vector<4x128xf32>
      %108 = arith.mulf %106, %107 : vector<4x128xf32>
      %109 = vector.broadcast %25 : vector<4x1xf32> to vector<4x128xf32>
      %110 = vector.broadcast %104 : vector<1x128xf32> to vector<4x128xf32>
      %111 = arith.mulf %109, %110 : vector<4x128xf32>
      %112 = arith.addf %108, %111 : vector<4x128xf32>
      %113 = vector.broadcast %26 : vector<4x1xf32> to vector<4x128xf32>
      %114 = arith.addf %112, %113 : vector<4x128xf32>
      %115 = arith.negf %114 : vector<4x128xf32>
      %116 = math.exp %115 : vector<4x128xf32>
      %cst_43 = arith.constant 1.000000e+00 : f32
      %117 = vector.broadcast %cst_43 : f32 to vector<4x128xf32>
      %118 = arith.addf %117, %116 : vector<4x128xf32>
      %119 = arith.divf %117, %118 : vector<4x128xf32>
      %120 = vector.extract_strided_slice %119 {offsets = [0, 0], sizes = [1, 128], strides = [1, 1]} : vector<4x128xf32> to vector<1x128xf32>
      %121 = vector.extract_strided_slice %119 {offsets = [1, 0], sizes = [1, 128], strides = [1, 1]} : vector<4x128xf32> to vector<1x128xf32>
      %122 = vector.extract_strided_slice %119 {offsets = [2, 0], sizes = [1, 128], strides = [1, 1]} : vector<4x128xf32> to vector<1x128xf32>
      %cst_44 = arith.constant 2.000000e+00 : f32
      %123 = vector.broadcast %cst_44 : f32 to vector<1x128xf32>
      %124 = arith.mulf %123, %122 : vector<1x128xf32>
      %cst_45 = arith.constant 1.000000e+00 : f32
      %125 = vector.broadcast %cst_45 : f32 to vector<1x128xf32>
      %126 = arith.subf %124, %125 : vector<1x128xf32>
      %127 = vector.extract_strided_slice %119 {offsets = [3, 0], sizes = [1, 128], strides = [1, 1]} : vector<4x128xf32> to vector<1x128xf32>
      %128 = arith.mulf %121, %92 : vector<1x128xf32>
      %129 = arith.mulf %120, %126 : vector<1x128xf32>
      %130 = arith.addf %128, %129 : vector<1x128xf32>
      %cst_46 = arith.constant 2.000000e+00 : f32
      %131 = vector.broadcast %cst_46 : f32 to vector<1x128xf32>
      %132 = arith.mulf %131, %130 : vector<1x128xf32>
      %133 = arith.negf %132 : vector<1x128xf32>
      %134 = math.exp %133 : vector<1x128xf32>
      %cst_47 = arith.constant 1.000000e+00 : f32
      %135 = vector.broadcast %cst_47 : f32 to vector<1x128xf32>
      %136 = arith.addf %135, %134 : vector<1x128xf32>
      %137 = arith.divf %135, %136 : vector<1x128xf32>
      %cst_48 = arith.constant 2.000000e+00 : f32
      %138 = vector.broadcast %cst_48 : f32 to vector<1x128xf32>
      %139 = arith.mulf %138, %137 : vector<1x128xf32>
      %cst_49 = arith.constant 1.000000e+00 : f32
      %140 = vector.broadcast %cst_49 : f32 to vector<1x128xf32>
      %141 = arith.subf %139, %140 : vector<1x128xf32>
      %142 = arith.mulf %127, %141 : vector<1x128xf32>
      %143 = vector.extract_strided_slice %23 {offsets = [3, 0], sizes = [1, 128], strides = [1, 1]} : vector<8x128xf32> to vector<1x128xf32>
      %144 = vector.broadcast %24 : vector<4x1xf32> to vector<4x128xf32>
      %145 = vector.broadcast %143 : vector<1x128xf32> to vector<4x128xf32>
      %146 = arith.mulf %144, %145 : vector<4x128xf32>
      %147 = vector.broadcast %25 : vector<4x1xf32> to vector<4x128xf32>
      %148 = vector.broadcast %142 : vector<1x128xf32> to vector<4x128xf32>
      %149 = arith.mulf %147, %148 : vector<4x128xf32>
      %150 = arith.addf %146, %149 : vector<4x128xf32>
      %151 = vector.broadcast %26 : vector<4x1xf32> to vector<4x128xf32>
      %152 = arith.addf %150, %151 : vector<4x128xf32>
      %153 = arith.negf %152 : vector<4x128xf32>
      %154 = math.exp %153 : vector<4x128xf32>
      %cst_50 = arith.constant 1.000000e+00 : f32
      %155 = vector.broadcast %cst_50 : f32 to vector<4x128xf32>
      %156 = arith.addf %155, %154 : vector<4x128xf32>
      %157 = arith.divf %155, %156 : vector<4x128xf32>
      %158 = vector.extract_strided_slice %157 {offsets = [0, 0], sizes = [1, 128], strides = [1, 1]} : vector<4x128xf32> to vector<1x128xf32>
      %159 = vector.extract_strided_slice %157 {offsets = [1, 0], sizes = [1, 128], strides = [1, 1]} : vector<4x128xf32> to vector<1x128xf32>
      %160 = vector.extract_strided_slice %157 {offsets = [2, 0], sizes = [1, 128], strides = [1, 1]} : vector<4x128xf32> to vector<1x128xf32>
      %cst_51 = arith.constant 2.000000e+00 : f32
      %161 = vector.broadcast %cst_51 : f32 to vector<1x128xf32>
      %162 = arith.mulf %161, %160 : vector<1x128xf32>
      %cst_52 = arith.constant 1.000000e+00 : f32
      %163 = vector.broadcast %cst_52 : f32 to vector<1x128xf32>
      %164 = arith.subf %162, %163 : vector<1x128xf32>
      %165 = vector.extract_strided_slice %157 {offsets = [3, 0], sizes = [1, 128], strides = [1, 1]} : vector<4x128xf32> to vector<1x128xf32>
      %166 = arith.mulf %159, %130 : vector<1x128xf32>
      %167 = arith.mulf %158, %164 : vector<1x128xf32>
      %168 = arith.addf %166, %167 : vector<1x128xf32>
      %cst_53 = arith.constant 2.000000e+00 : f32
      %169 = vector.broadcast %cst_53 : f32 to vector<1x128xf32>
      %170 = arith.mulf %169, %168 : vector<1x128xf32>
      %171 = arith.negf %170 : vector<1x128xf32>
      %172 = math.exp %171 : vector<1x128xf32>
      %cst_54 = arith.constant 1.000000e+00 : f32
      %173 = vector.broadcast %cst_54 : f32 to vector<1x128xf32>
      %174 = arith.addf %173, %172 : vector<1x128xf32>
      %175 = arith.divf %173, %174 : vector<1x128xf32>
      %cst_55 = arith.constant 2.000000e+00 : f32
      %176 = vector.broadcast %cst_55 : f32 to vector<1x128xf32>
      %177 = arith.mulf %176, %175 : vector<1x128xf32>
      %cst_56 = arith.constant 1.000000e+00 : f32
      %178 = vector.broadcast %cst_56 : f32 to vector<1x128xf32>
      %179 = arith.subf %177, %178 : vector<1x128xf32>
      %180 = arith.mulf %165, %179 : vector<1x128xf32>
      %181 = vector.extract_strided_slice %23 {offsets = [4, 0], sizes = [1, 128], strides = [1, 1]} : vector<8x128xf32> to vector<1x128xf32>
      %182 = vector.broadcast %24 : vector<4x1xf32> to vector<4x128xf32>
      %183 = vector.broadcast %181 : vector<1x128xf32> to vector<4x128xf32>
      %184 = arith.mulf %182, %183 : vector<4x128xf32>
      %185 = vector.broadcast %25 : vector<4x1xf32> to vector<4x128xf32>
      %186 = vector.broadcast %180 : vector<1x128xf32> to vector<4x128xf32>
      %187 = arith.mulf %185, %186 : vector<4x128xf32>
      %188 = arith.addf %184, %187 : vector<4x128xf32>
      %189 = vector.broadcast %26 : vector<4x1xf32> to vector<4x128xf32>
      %190 = arith.addf %188, %189 : vector<4x128xf32>
      %191 = arith.negf %190 : vector<4x128xf32>
      %192 = math.exp %191 : vector<4x128xf32>
      %cst_57 = arith.constant 1.000000e+00 : f32
      %193 = vector.broadcast %cst_57 : f32 to vector<4x128xf32>
      %194 = arith.addf %193, %192 : vector<4x128xf32>
      %195 = arith.divf %193, %194 : vector<4x128xf32>
      %196 = vector.extract_strided_slice %195 {offsets = [0, 0], sizes = [1, 128], strides = [1, 1]} : vector<4x128xf32> to vector<1x128xf32>
      %197 = vector.extract_strided_slice %195 {offsets = [1, 0], sizes = [1, 128], strides = [1, 1]} : vector<4x128xf32> to vector<1x128xf32>
      %198 = vector.extract_strided_slice %195 {offsets = [2, 0], sizes = [1, 128], strides = [1, 1]} : vector<4x128xf32> to vector<1x128xf32>
      %cst_58 = arith.constant 2.000000e+00 : f32
      %199 = vector.broadcast %cst_58 : f32 to vector<1x128xf32>
      %200 = arith.mulf %199, %198 : vector<1x128xf32>
      %cst_59 = arith.constant 1.000000e+00 : f32
      %201 = vector.broadcast %cst_59 : f32 to vector<1x128xf32>
      %202 = arith.subf %200, %201 : vector<1x128xf32>
      %203 = vector.extract_strided_slice %195 {offsets = [3, 0], sizes = [1, 128], strides = [1, 1]} : vector<4x128xf32> to vector<1x128xf32>
      %204 = arith.mulf %197, %168 : vector<1x128xf32>
      %205 = arith.mulf %196, %202 : vector<1x128xf32>
      %206 = arith.addf %204, %205 : vector<1x128xf32>
      %cst_60 = arith.constant 2.000000e+00 : f32
      %207 = vector.broadcast %cst_60 : f32 to vector<1x128xf32>
      %208 = arith.mulf %207, %206 : vector<1x128xf32>
      %209 = arith.negf %208 : vector<1x128xf32>
      %210 = math.exp %209 : vector<1x128xf32>
      %cst_61 = arith.constant 1.000000e+00 : f32
      %211 = vector.broadcast %cst_61 : f32 to vector<1x128xf32>
      %212 = arith.addf %211, %210 : vector<1x128xf32>
      %213 = arith.divf %211, %212 : vector<1x128xf32>
      %cst_62 = arith.constant 2.000000e+00 : f32
      %214 = vector.broadcast %cst_62 : f32 to vector<1x128xf32>
      %215 = arith.mulf %214, %213 : vector<1x128xf32>
      %cst_63 = arith.constant 1.000000e+00 : f32
      %216 = vector.broadcast %cst_63 : f32 to vector<1x128xf32>
      %217 = arith.subf %215, %216 : vector<1x128xf32>
      %218 = arith.mulf %203, %217 : vector<1x128xf32>
      %219 = vector.extract_strided_slice %23 {offsets = [5, 0], sizes = [1, 128], strides = [1, 1]} : vector<8x128xf32> to vector<1x128xf32>
      %220 = vector.broadcast %24 : vector<4x1xf32> to vector<4x128xf32>
      %221 = vector.broadcast %219 : vector<1x128xf32> to vector<4x128xf32>
      %222 = arith.mulf %220, %221 : vector<4x128xf32>
      %223 = vector.broadcast %25 : vector<4x1xf32> to vector<4x128xf32>
      %224 = vector.broadcast %218 : vector<1x128xf32> to vector<4x128xf32>
      %225 = arith.mulf %223, %224 : vector<4x128xf32>
      %226 = arith.addf %222, %225 : vector<4x128xf32>
      %227 = vector.broadcast %26 : vector<4x1xf32> to vector<4x128xf32>
      %228 = arith.addf %226, %227 : vector<4x128xf32>
      %229 = arith.negf %228 : vector<4x128xf32>
      %230 = math.exp %229 : vector<4x128xf32>
      %cst_64 = arith.constant 1.000000e+00 : f32
      %231 = vector.broadcast %cst_64 : f32 to vector<4x128xf32>
      %232 = arith.addf %231, %230 : vector<4x128xf32>
      %233 = arith.divf %231, %232 : vector<4x128xf32>
      %234 = vector.extract_strided_slice %233 {offsets = [0, 0], sizes = [1, 128], strides = [1, 1]} : vector<4x128xf32> to vector<1x128xf32>
      %235 = vector.extract_strided_slice %233 {offsets = [1, 0], sizes = [1, 128], strides = [1, 1]} : vector<4x128xf32> to vector<1x128xf32>
      %236 = vector.extract_strided_slice %233 {offsets = [2, 0], sizes = [1, 128], strides = [1, 1]} : vector<4x128xf32> to vector<1x128xf32>
      %cst_65 = arith.constant 2.000000e+00 : f32
      %237 = vector.broadcast %cst_65 : f32 to vector<1x128xf32>
      %238 = arith.mulf %237, %236 : vector<1x128xf32>
      %cst_66 = arith.constant 1.000000e+00 : f32
      %239 = vector.broadcast %cst_66 : f32 to vector<1x128xf32>
      %240 = arith.subf %238, %239 : vector<1x128xf32>
      %241 = vector.extract_strided_slice %233 {offsets = [3, 0], sizes = [1, 128], strides = [1, 1]} : vector<4x128xf32> to vector<1x128xf32>
      %242 = arith.mulf %235, %206 : vector<1x128xf32>
      %243 = arith.mulf %234, %240 : vector<1x128xf32>
      %244 = arith.addf %242, %243 : vector<1x128xf32>
      %cst_67 = arith.constant 2.000000e+00 : f32
      %245 = vector.broadcast %cst_67 : f32 to vector<1x128xf32>
      %246 = arith.mulf %245, %244 : vector<1x128xf32>
      %247 = arith.negf %246 : vector<1x128xf32>
      %248 = math.exp %247 : vector<1x128xf32>
      %cst_68 = arith.constant 1.000000e+00 : f32
      %249 = vector.broadcast %cst_68 : f32 to vector<1x128xf32>
      %250 = arith.addf %249, %248 : vector<1x128xf32>
      %251 = arith.divf %249, %250 : vector<1x128xf32>
      %cst_69 = arith.constant 2.000000e+00 : f32
      %252 = vector.broadcast %cst_69 : f32 to vector<1x128xf32>
      %253 = arith.mulf %252, %251 : vector<1x128xf32>
      %cst_70 = arith.constant 1.000000e+00 : f32
      %254 = vector.broadcast %cst_70 : f32 to vector<1x128xf32>
      %255 = arith.subf %253, %254 : vector<1x128xf32>
      %256 = arith.mulf %241, %255 : vector<1x128xf32>
      %257 = vector.extract_strided_slice %23 {offsets = [6, 0], sizes = [1, 128], strides = [1, 1]} : vector<8x128xf32> to vector<1x128xf32>
      %258 = vector.broadcast %24 : vector<4x1xf32> to vector<4x128xf32>
      %259 = vector.broadcast %257 : vector<1x128xf32> to vector<4x128xf32>
      %260 = arith.mulf %258, %259 : vector<4x128xf32>
      %261 = vector.broadcast %25 : vector<4x1xf32> to vector<4x128xf32>
      %262 = vector.broadcast %256 : vector<1x128xf32> to vector<4x128xf32>
      %263 = arith.mulf %261, %262 : vector<4x128xf32>
      %264 = arith.addf %260, %263 : vector<4x128xf32>
      %265 = vector.broadcast %26 : vector<4x1xf32> to vector<4x128xf32>
      %266 = arith.addf %264, %265 : vector<4x128xf32>
      %267 = arith.negf %266 : vector<4x128xf32>
      %268 = math.exp %267 : vector<4x128xf32>
      %cst_71 = arith.constant 1.000000e+00 : f32
      %269 = vector.broadcast %cst_71 : f32 to vector<4x128xf32>
      %270 = arith.addf %269, %268 : vector<4x128xf32>
      %271 = arith.divf %269, %270 : vector<4x128xf32>
      %272 = vector.extract_strided_slice %271 {offsets = [0, 0], sizes = [1, 128], strides = [1, 1]} : vector<4x128xf32> to vector<1x128xf32>
      %273 = vector.extract_strided_slice %271 {offsets = [1, 0], sizes = [1, 128], strides = [1, 1]} : vector<4x128xf32> to vector<1x128xf32>
      %274 = vector.extract_strided_slice %271 {offsets = [2, 0], sizes = [1, 128], strides = [1, 1]} : vector<4x128xf32> to vector<1x128xf32>
      %cst_72 = arith.constant 2.000000e+00 : f32
      %275 = vector.broadcast %cst_72 : f32 to vector<1x128xf32>
      %276 = arith.mulf %275, %274 : vector<1x128xf32>
      %cst_73 = arith.constant 1.000000e+00 : f32
      %277 = vector.broadcast %cst_73 : f32 to vector<1x128xf32>
      %278 = arith.subf %276, %277 : vector<1x128xf32>
      %279 = vector.extract_strided_slice %271 {offsets = [3, 0], sizes = [1, 128], strides = [1, 1]} : vector<4x128xf32> to vector<1x128xf32>
      %280 = arith.mulf %273, %244 : vector<1x128xf32>
      %281 = arith.mulf %272, %278 : vector<1x128xf32>
      %282 = arith.addf %280, %281 : vector<1x128xf32>
      %cst_74 = arith.constant 2.000000e+00 : f32
      %283 = vector.broadcast %cst_74 : f32 to vector<1x128xf32>
      %284 = arith.mulf %283, %282 : vector<1x128xf32>
      %285 = arith.negf %284 : vector<1x128xf32>
      %286 = math.exp %285 : vector<1x128xf32>
      %cst_75 = arith.constant 1.000000e+00 : f32
      %287 = vector.broadcast %cst_75 : f32 to vector<1x128xf32>
      %288 = arith.addf %287, %286 : vector<1x128xf32>
      %289 = arith.divf %287, %288 : vector<1x128xf32>
      %cst_76 = arith.constant 2.000000e+00 : f32
      %290 = vector.broadcast %cst_76 : f32 to vector<1x128xf32>
      %291 = arith.mulf %290, %289 : vector<1x128xf32>
      %cst_77 = arith.constant 1.000000e+00 : f32
      %292 = vector.broadcast %cst_77 : f32 to vector<1x128xf32>
      %293 = arith.subf %291, %292 : vector<1x128xf32>
      %294 = arith.mulf %279, %293 : vector<1x128xf32>
      %295 = vector.extract_strided_slice %23 {offsets = [7, 0], sizes = [1, 128], strides = [1, 1]} : vector<8x128xf32> to vector<1x128xf32>
      %296 = vector.broadcast %24 : vector<4x1xf32> to vector<4x128xf32>
      %297 = vector.broadcast %295 : vector<1x128xf32> to vector<4x128xf32>
      %298 = arith.mulf %296, %297 : vector<4x128xf32>
      %299 = vector.broadcast %25 : vector<4x1xf32> to vector<4x128xf32>
      %300 = vector.broadcast %294 : vector<1x128xf32> to vector<4x128xf32>
      %301 = arith.mulf %299, %300 : vector<4x128xf32>
      %302 = arith.addf %298, %301 : vector<4x128xf32>
      %303 = vector.broadcast %26 : vector<4x1xf32> to vector<4x128xf32>
      %304 = arith.addf %302, %303 : vector<4x128xf32>
      %305 = arith.negf %304 : vector<4x128xf32>
      %306 = math.exp %305 : vector<4x128xf32>
      %cst_78 = arith.constant 1.000000e+00 : f32
      %307 = vector.broadcast %cst_78 : f32 to vector<4x128xf32>
      %308 = arith.addf %307, %306 : vector<4x128xf32>
      %309 = arith.divf %307, %308 : vector<4x128xf32>
      %310 = vector.extract_strided_slice %309 {offsets = [0, 0], sizes = [1, 128], strides = [1, 1]} : vector<4x128xf32> to vector<1x128xf32>
      %311 = vector.extract_strided_slice %309 {offsets = [1, 0], sizes = [1, 128], strides = [1, 1]} : vector<4x128xf32> to vector<1x128xf32>
      %312 = vector.extract_strided_slice %309 {offsets = [2, 0], sizes = [1, 128], strides = [1, 1]} : vector<4x128xf32> to vector<1x128xf32>
      %cst_79 = arith.constant 2.000000e+00 : f32
      %313 = vector.broadcast %cst_79 : f32 to vector<1x128xf32>
      %314 = arith.mulf %313, %312 : vector<1x128xf32>
      %cst_80 = arith.constant 1.000000e+00 : f32
      %315 = vector.broadcast %cst_80 : f32 to vector<1x128xf32>
      %316 = arith.subf %314, %315 : vector<1x128xf32>
      %317 = vector.extract_strided_slice %309 {offsets = [3, 0], sizes = [1, 128], strides = [1, 1]} : vector<4x128xf32> to vector<1x128xf32>
      %318 = arith.mulf %311, %282 : vector<1x128xf32>
      %319 = arith.mulf %310, %316 : vector<1x128xf32>
      %320 = arith.addf %318, %319 : vector<1x128xf32>
      %cst_81 = arith.constant 2.000000e+00 : f32
      %321 = vector.broadcast %cst_81 : f32 to vector<1x128xf32>
      %322 = arith.mulf %321, %320 : vector<1x128xf32>
      %323 = arith.negf %322 : vector<1x128xf32>
      %324 = math.exp %323 : vector<1x128xf32>
      %cst_82 = arith.constant 1.000000e+00 : f32
      %325 = vector.broadcast %cst_82 : f32 to vector<1x128xf32>
      %326 = arith.addf %325, %324 : vector<1x128xf32>
      %327 = arith.divf %325, %326 : vector<1x128xf32>
      %cst_83 = arith.constant 2.000000e+00 : f32
      %328 = vector.broadcast %cst_83 : f32 to vector<1x128xf32>
      %329 = arith.mulf %328, %327 : vector<1x128xf32>
      %cst_84 = arith.constant 1.000000e+00 : f32
      %330 = vector.broadcast %cst_84 : f32 to vector<1x128xf32>
      %331 = arith.subf %329, %330 : vector<1x128xf32>
      %332 = arith.mulf %317, %331 : vector<1x128xf32>
      %333 = tpu.concatenate %66, %104, %142, %180, %218, %256, %294, %332 in 0 : vector<1x128xf32>, vector<1x128xf32>, vector<1x128xf32>, vector<1x128xf32>, vector<1x128xf32>, vector<1x128xf32>, vector<1x128xf32>, vector<1x128xf32> -> vector<8x128xf32>
      %c0_85 = arith.constant 0 : index
      %c0_86 = arith.constant 0 : index
      %334 = vector.load %arg11[%c0_85, %c0_86] : memref<4x8xf32, #tpu.memory_space<vmem>>, vector<4x8xf32>
      %cst_87 = arith.constant dense<0.000000e+00> : vector<4x128xf32>
      %335 = tpu.matmul %334, %333, %cst_87 {dimension_numbers = #tpu.dot_dimension_numbers<[1], [0], [0], [1], [0, 0, 1, 1], [], []>, precision = #tpu.contract_precision<fp32>} : vector<4x8xf32>, vector<8x128xf32>, vector<4x128xf32> -> vector<4x128xf32>
      %c0_88 = arith.constant 0 : index
      %c0_89 = arith.constant 0 : index
      %336 = vector.load %arg12[%c0_88, %c0_89] : memref<4x1xf32, #tpu.memory_space<vmem>>, vector<4x1xf32>
      %337 = vector.broadcast %336 : vector<4x1xf32> to vector<4x128xf32>
      %338 = arith.addf %335, %337 : vector<4x128xf32>
      %c0_90 = arith.constant 0 : index
      %c0_91 = arith.constant 0 : index
      %339 = vector.load %arg13[%c0_90, %c0_91] : memref<4x128xf32, #tpu.memory_space<vmem>>, vector<4x128xf32>
      tpu.vector_store %arg13[%c0_90, %c0_91], %338 {strides = array<i32>} : memref<4x128xf32, #tpu.memory_space<vmem>>, vector<4x128xf32>,
    } else {
    }
    return
  }
  func.func @transform_0(%arg0: i32, %arg1: i32) -> (i32, i32) {
    %c0_i32 = arith.constant 0 : i32
    return %arg1, %arg0 : i32, i32
  }
  func.func @transform_1(%arg0: i32, %arg1: i32) -> (i32, i32) {
    %c0_i32 = arith.constant 0 : i32
    %c0_i32_0 = arith.constant 0 : i32
    return %c0_i32, %arg1 : i32, i32
  }
  func.func @transform_2(%arg0: i32, %arg1: i32) -> (i32, i32) {
    %c0_i32 = arith.constant 0 : i32
    %c0_i32_0 = arith.constant 0 : i32
    return %c0_i32, %arg0 : i32, i32
  }
  func.func @transform_3(%arg0: i32, %arg1: i32) -> (i32, i32) {
    %c0_i32 = arith.constant 0 : i32
    %c0_i32_0 = arith.constant 0 : i32
    return %c0_i32, %arg0 : i32, i32
  }
  func.func @transform_4(%arg0: i32, %arg1: i32) -> (i32, i32) {
    %c0_i32 = arith.constant 0 : i32
    %c0_i32_0 = arith.constant 0 : i32
    %c0_i32_1 = arith.constant 0 : i32
    return %c0_i32, %c0_i32_0 : i32, i32
  }
  func.func @transform_5(%arg0: i32, %arg1: i32) -> (i32, i32) {
    %c0_i32 = arith.constant 0 : i32
    %c0_i32_0 = arith.constant 0 : i32
    %c0_i32_1 = arith.constant 0 : i32
    return %c0_i32, %c0_i32_0 : i32, i32
  }
  func.func @transform_6(%arg0: i32, %arg1: i32) -> (i32, i32) {
    %c0_i32 = arith.constant 0 : i32
    %c0_i32_0 = arith.constant 0 : i32
    %c0_i32_1 = arith.constant 0 : i32
    return %c0_i32, %c0_i32_0 : i32, i32
  }
  func.func @transform_7(%arg0: i32, %arg1: i32) -> (i32, i32) {
    %c0_i32 = arith.constant 0 : i32
    %c0_i32_0 = arith.constant 0 : i32
    %c0_i32_1 = arith.constant 0 : i32
    return %c0_i32, %c0_i32_0 : i32, i32
  }
  func.func @transform_8(%arg0: i32, %arg1: i32) -> (i32, i32) {
    %c0_i32 = arith.constant 0 : i32
    %c0_i32_0 = arith.constant 0 : i32
    %c0_i32_1 = arith.constant 0 : i32
    return %c0_i32, %c0_i32_0 : i32, i32
  }
  func.func @transform_9(%arg0: i32, %arg1: i32) -> (i32, i32) {
    %c0_i32 = arith.constant 0 : i32
    %c0_i32_0 = arith.constant 0 : i32
    %c0_i32_1 = arith.constant 0 : i32
    return %c0_i32, %c0_i32_0 : i32, i32
  }
  func.func @transform_10(%arg0: i32, %arg1: i32) -> (i32, i32) {
    %c0_i32 = arith.constant 0 : i32
    %c0_i32_0 = arith.constant 0 : i32
    %c0_i32_1 = arith.constant 0 : i32
    return %c0_i32, %c0_i32_0 : i32, i32
  }
  func.func @transform_11(%arg0: i32, %arg1: i32) -> (i32, i32) {
    %c0_i32 = arith.constant 0 : i32
    %c0_i32_0 = arith.constant 0 : i32
    return %c0_i32, %arg0 : i32, i32
  }
}

</mosaic_0001>

<bundles_post_ra>
// kernel: tpu_custom_call.1
= control target key start
LH: loop header
LB: loop body
LE: loop exit
PB: predicated region body
PF: predicated region fallthrough
CT: control target
= control target key end

     0   :  { %16 = vsyncpa [#allocation4], 0  ;;  %s1918_s0 = inlined_call_operand.hbm [shape: bf16[128,128], index: 0, kind: input, shape index: {}]   ;;  %s1919_s1 = inlined_call_operand.vmem [shape: f32[8,128], index: 1, kind: input, shape index: {}]   ;;  %s1920_s2 = inlined_call_operand.hbm [shape: f32[8,128], index: 2, kind: input, shape index: {}]   ;;  %s1921_s3 = inlined_call_operand.vmem [shape: f32[1,128], index: 3, kind: input, shape index: {}]   ;;  %s1922_s4 = inlined_call_operand.hbm [shape: f32[8,16], index: 4, kind: input, shape index: {}]   ;;  %s1923_s5 = inlined_call_operand.vmem [shape: f32[8,1], index: 5, kind: input, shape index: {}]   ;;  %s1924_s6 = inlined_call_operand.vmem [shape: f32[4,1], index: 6, kind: input, shape index: {}]   ;;  %s1925_s7 = inlined_call_operand.vmem [shape: f32[4,1], index: 7, kind: input, shape index: {}]   ;;  %s1926_s8 = inlined_call_operand.vmem [shape: f32[4,1], index: 8, kind: input, shape index: {}]   ;;  %s1927_s9 = inlined_call_operand.vmem [shape: f32[4,8], index: 9, kind: input, shape index: {}]   ;;  %s1928_s10 = inlined_call_operand.vmem [shape: f32[4,1], index: 10, kind: input, shape index: {}]   ;;  %s1929_s11 = inlined_call_operand.hbm [shape: f32[4,128], index: 11, kind: output, shape index: {}]  }
   0x1   :  { %17 = vsyncpa [#allocation7], 0  ;;  %s39_s19 = sshll.u32 %s1920_s2, 4  ;;  %s40_s19 = int_to_ptr.hbm [resolvable:$true] %s39_s19 }
   0x2   :  { %18 = vsyncpa [#allocation5], 0  ;;  %s1520_s20 = smov [#allocation6]   ;;  %s23_s24 = sshll.u32 %s1918_s0, 4  ;;  %s24_s24 = int_to_ptr.hbm [resolvable:$true] %s23_s24 }
   0x3   :  { %s41_s21 = sshll.u32 %s1520_s20, 4  ;;  %s1521_s25 = smov [#allocation3]   ;;  %s42_s21 = int_to_ptr.vmem [resolvable:$true] %s41_s21 }
   0x4   :  { %44 = dma.hbm_to_vmem [thread:$0]  %s40_s19, 128, %s42_s21, [#allocation7]  }
   0x5   :  { %s25_s26 = sshll.u32 %s1521_s25, 4  ;;  %s1522_s27 = smov 64   ;;  %s26_s26 = int_to_ptr.vmem [resolvable:$true] %s25_s26 }
   0x6   :  { %s1523_s28 = smov 4   ;;  %s52_s2 = sshll.u32 %s1922_s4, 4  ;;  %s53_s2 = int_to_ptr.hbm [resolvable:$true] %s52_s2 }
   0x7   :  { %31 = dma.hbm_to_vmem [thread:$0]  %s24_s24, 1024, %s26_s26, [#allocation4], %s1522_s27, %s1522_s27, %s1523_s28  }
   0x8   :  { %s1524_s12 = smov [#allocation8]  }
   0x9   :  { %s54_s13 = sshll.u32 %s1524_s12, 4  ;;  %s55_s13 = int_to_ptr.vmem [resolvable:$true] %s54_s13 }
   0xa   :  { %57 = dma.hbm_to_vmem [thread:$0]  %s53_s2, 128, %s55_s13, [#allocation7]  }
   0xb   :  { %1514 = dma.done.wait [#allocation4], 1024  }
   0xc   :  { %1515 = vsyncadd [#allocation4], 4294966272 }
   0xd   :  { %1516 = dma.done.wait [#allocation7], 256  }
   0xe   :  { %1517 = vsyncadd [#allocation7], 4294967040  ;;  %v1342_v0 = vld [vmem:[#allocation3 + $0x38] sm:$0xff]   ;;  %v1341_v1 = vld [vmem:[#allocation3 + $0x30] sm:$0xff]   ;;  %vm385_vm0 = vcmask 130048   ;;  %s1261_s24 = sshll.u32 %s1929_s11, 4  ;;  %s1262_s24 = int_to_ptr.hbm [resolvable:$true] %s1261_s24 }
   0xf   :  { %v1340_v2 = vld [vmem:[#allocation3 + $0x28] sm:$0xff]   ;;  %v1596_v3 = vunpack.c.h.bf16 %v1342_v0  ;;  %v1598_v4 = vunpack.c.l.bf16 %v1342_v0  ;;  %v1600_v5 = vunpack.c.h.bf16 %v1341_v1  ;;  %v1602_v6 = vunpack.c.l.bf16 %v1341_v1  ;;  %v1339_v7 = vld [vmem:[#allocation3 + $0x20] sm:$0xff]   ;;  %v1338_v15 = vld [vmem:[#allocation3 + $0x18] sm:$0xff]  }
  0x10   :  { %v1604_v8 = vunpack.c.h.bf16 %v1340_v2  ;;  %v1606_v9 = vunpack.c.l.bf16 %v1340_v2  ;;  %v1608_v10 = vunpack.c.h.bf16 %v1339_v7  ;;  %v1631_v17 = vunpack.c.l.bf16 %v1339_v7  ;;  %v1337_v31 = vld [vmem:[#allocation3 + $0x10] sm:$0xff]   ;;  %v1336_v41 = vld [vmem:[#allocation3 + $0x8] sm:$0xff]   ;;  %v1305_v53 = vld [vmem:[#allocation3] sm:$0xff]  }
  0x11   :  { %121 = vmatpush.msra.mxu0 %v1596_v3  ;;  %v1613_v11 = vsub.f32 %v1596_v3, %v1596_v3  ;;  %v1617_v12 = vsub.f32 %v1598_v4, %v1598_v4  ;;  %v1621_v13 = vsub.f32 %v1600_v5, %v1600_v5  ;;  %v1625_v14 = vsub.f32 %v1602_v6, %v1602_v6  ;;  %v88_v60 = vld [vmem:[%s1919_s1] sm:$0xff] }
  0x12   :  { %v1629_v16 = vsub.f32 %v1604_v8, %v1604_v8  ;;  %v1635_v18 = vsub.f32 %v1606_v9, %v1606_v9  ;;  %269 = vmatpush.msra.mxu3 %v1596_v3  ;;  %v1644_v23 = vunpack.c.h.bf16 %v1338_v15  ;;  %v1648_v24 = vsub.f32 %v1608_v10, %v1608_v10 }
  0x13   :  { %122 = vmatpush.msra.mxu0 %v1598_v4  ;;  %v147_v19 = vand.u32 4294901760, %v1613_v11  ;;  %v152_v20 = vand.u32 4294901760, %v1617_v12  ;;  %v157_v21 = vand.u32 4294901760, %v1621_v13  ;;  %v162_v22 = vand.u32 4294901760, %v1625_v14  ;;  %232 = vmatpush.msra.mxu2 %v1613_v11 }
  0x14   :  { %270 = vmatpush.msra.mxu3 %v1598_v4  ;;  %v167_v28 = vand.u32 4294901760, %v1629_v16  ;;  %v172_v29 = vand.u32 4294901760, %v1635_v18  ;;  %v1665_v30 = vsub.f32 %v1631_v17, %v1631_v17  ;;  %v1672_v35 = vunpack.c.l.bf16 %v1338_v15 }
  0x15   :  { %123 = vmatpush.msra.mxu0 %v1600_v5  ;;  %v148_v25 = vsub.f32 %v1613_v11, %v147_v19  ;;  %v153_v26 = vsub.f32 %v1617_v12, %v152_v20  ;;  %v158_v27 = vsub.f32 %v1621_v13, %v157_v21  ;;  %234 = vmatpush.msra.mxu2 %v1617_v12  ;;  %v177_v36 = vand.u32 4294901760, %v1648_v24 }
  0x16   :  { %v163_v34 = vsub.f32 %v1625_v14, %v162_v22  ;;  %271 = vmatpush.msra.mxu3 %v1600_v5  ;;  %v168_v38 = vsub.f32 %v1629_v16, %v167_v28  ;;  %v1681_v39 = vunpack.c.h.bf16 %v1337_v31  ;;  %v1685_v40 = vsub.f32 %v1644_v23, %v1644_v23 }
  0x17   :  { %v149_v32 = vand.u32 4294901760, %v148_v25  ;;  %124 = vmatpush.msra.mxu0 %v1602_v6  ;;  %v154_v33 = vand.u32 4294901760, %v153_v26  ;;  %236 = vmatpush.msra.mxu2 %v1621_v13  ;;  %v159_v37 = vand.u32 4294901760, %v158_v27  ;;  %v182_v42 = vand.u32 4294901760, %v1665_v30 }
  0x18   :  { %272 = vmatpush.msra.mxu3 %v1602_v6  ;;  %v164_v43 = vand.u32 4294901760, %v163_v34  ;;  %v173_v44 = vsub.f32 %v1635_v18, %v172_v29  ;;  %v1694_v45 = vunpack.c.l.bf16 %v1337_v31  ;;  %v1698_v46 = vsub.f32 %v1672_v35, %v1672_v35 }
  0x19   :  { %150 = vmatpush.msra.mxu1 %v149_v32  ;;  %125 = vmatpush.msra.mxu0 %v1604_v8  ;;  %v178_v47 = vsub.f32 %v1648_v24, %v177_v36  ;;  %v1703_v48 = vunpack.c.h.bf16 %v1336_v41  ;;  %v169_v49 = vand.u32 4294901760, %v168_v38  ;;  %v187_v50 = vand.u32 4294901760, %v1685_v40 }
  0x1a   :  { %238 = vmatpush.msra.mxu2 %v1625_v14  ;;  %273 = vmatpush.msra.mxu3 %v1604_v8  ;;  %v1711_v51 = vsub.f32 %v1681_v39, %v1681_v39  ;;  %v183_v52 = vsub.f32 %v1665_v30, %v182_v42  ;;  %v174_v54 = vand.u32 4294901760, %v173_v44  ;;  %v192_v55 = vand.u32 4294901760, %v1698_v46 }
  0x1b   :  { %155 = vmatpush.msra.mxu1 %v154_v33  ;;  %126 = vmatpush.msra.mxu0 %v1606_v9  ;;  %v1720_v56 = vunpack.c.l.bf16 %v1336_v41  ;;  %v1724_v57 = vsub.f32 %v1694_v45, %v1694_v45  ;;  %v179_v58 = vand.u32 4294901760, %v178_v47  ;;  %v1728_v59 = vsub.f32 %v1703_v48, %v1703_v48 }
  0x1c   :  { %240 = vmatpush.msra.mxu2 %v1629_v16  ;;  %274 = vmatpush.msra.mxu3 %v1606_v9  ;;  %v188_v61 = vsub.f32 %v1685_v40, %v187_v50  ;;  %v197_v62 = vand.u32 4294901760, %v1711_v51  ;;  %v1740_v63 = vunpack.c.h.bf16 %v1305_v53  ;;  %v1742_v0 = vand.u32 4294901760, %v88_v60 }
  0x1d   :  { %160 = vmatpush.msra.mxu1 %v159_v37  ;;  %127 = vmatpush.msra.mxu0 %v1608_v10  ;;  %v184_v1 = vand.u32 4294901760, %v183_v52  ;;  %v193_v2 = vsub.f32 %v1698_v46, %v192_v55  ;;  %v202_v7 = vand.u32 4294901760, %v1724_v57  ;;  %v1751_v15 = vunpack.c.l.bf16 %v1305_v53 }
  0x1e   :  { %242 = vmatpush.msra.mxu2 %v1635_v18  ;;  %275 = vmatpush.msra.mxu3 %v1608_v10  ;;  %v1755_v25 = vsub.f32 %v1720_v56, %v1720_v56  ;;  %v207_v26 = vand.u32 4294901760, %v1728_v59  ;;  %v189_v27 = vand.u32 4294901760, %v188_v61  ;;  %v198_v31 = vsub.f32 %v1711_v51, %v197_v62 }
  0x1f   :  { %165 = vmatpush.msra.mxu1 %v164_v43  ;;  %128 = vmatpush.msra.mxu0 %v1631_v17  ;;  %v1766_v32 = vsub.f32 %v1740_v63, %v1740_v63  ;;  %v138_v33 = vsub.f32 %v88_v60, %v1742_v0  ;;  %v194_v34 = vand.u32 4294901760, %v193_v2  ;;  %v203_v37 = vsub.f32 %v1724_v57, %v202_v7 }
  0x20   :  { %244 = vmatpush.msra.mxu2 %v1648_v24  ;;  %276 = vmatpush.msra.mxu3 %v1631_v17  ;;  %v212_v38 = vand.u32 4294901760, %v1755_v25  ;;  %v1778_v41 = vsub.f32 %v1751_v15, %v1751_v15  ;;  %v199_v43 = vand.u32 4294901760, %v198_v31  ;;  %v208_v44 = vsub.f32 %v1728_v59, %v207_v26 }
  0x21   :  { %170 = vmatpush.msra.mxu1 %v169_v49  ;;  %129 = vmatpush.msra.mxu0 %v1644_v23  ;;  %v217_v47 = vand.u32 4294901760, %v1766_v32  ;;  %v139_v49 = vand.u32 4294901760, %v138_v33  ;;  %v204_v52 = vand.u32 4294901760, %v203_v37 }
  0x22   :  { %246 = vmatpush.msra.mxu2 %v1665_v30  ;;  %277 = vmatpush.msra.mxu3 %v1644_v23  ;;  %v213_v53 = vsub.f32 %v1755_v25, %v212_v38  ;;  %v1353_v30 = vld [vmem:[%s1921_s3] ss:$0 sm:$0xff] }
  0x23   :  { %175 = vmatpush.msra.mxu1 %v174_v54  ;;  %130 = vmatpush.msra.mxu0 %v1672_v35  ;;  %v222_v54 = vand.u32 4294901760, %v1778_v41  ;;  %v218_v60 = vsub.f32 %v1766_v32, %v217_v47  ;;  %v140_v61 = vsub.f32 %v138_v33, %v139_v49 }
  0x24   :  { %248 = vmatpush.msra.mxu2 %v1685_v40  ;;  %278 = vmatpush.msra.mxu3 %v1672_v35 }
  0x25   :  { %180 = vmatpush.msra.mxu1 %v179_v58  ;;  %131 = vmatpush.msra.mxu0 %v1681_v39  ;;  %v209_v58 = vand.u32 4294901760, %v208_v44  ;;  %v223_v2 = vsub.f32 %v1778_v41, %v222_v54  ;;  %v141_v31 = vand.u32 4294901760, %v140_v61 }
  0x26   :  { %250 = vmatpush.msra.mxu2 %v1698_v46  ;;  %279 = vmatpush.msra.mxu3 %v1681_v39 }
  0x27   :  { %185 = vmatpush.msra.mxu1 %v184_v1  ;;  %132 = vmatpush.msra.mxu0 %v1694_v45  ;;  %v214_v1 = vand.u32 4294901760, %v213_v53 }
  0x28   :  { %252 = vmatpush.msra.mxu2 %v1711_v51  ;;  %280 = vmatpush.msra.mxu3 %v1694_v45 }
  0x29   :  { %190 = vmatpush.msra.mxu1 %v189_v27  ;;  %133 = vmatpush.msra.mxu0 %v1703_v48  ;;  %v219_v27 = vand.u32 4294901760, %v218_v60 }
  0x2a   :  { %254 = vmatpush.msra.mxu2 %v1724_v57  ;;  %281 = vmatpush.msra.mxu3 %v1703_v48 }
  0x2b   :  { %195 = vmatpush.msra.mxu1 %v194_v34  ;;  %134 = vmatpush.msra.mxu0 %v1720_v56  ;;  %v224_v34 = vand.u32 4294901760, %v223_v2 }
  0x2c   :  { %256 = vmatpush.msra.mxu2 %v1728_v59  ;;  %282 = vmatpush.msra.mxu3 %v1720_v56 }
  0x2d   :  { %200 = vmatpush.msra.mxu1 %v199_v43  ;;  %135 = vmatpush.msra.mxu0 %v1740_v63 }
  0x2e   :  { %258 = vmatpush.msra.mxu2 %v1755_v25  ;;  %283 = vmatpush.msra.mxu3 %v1740_v63 }
  0x2f   :  { %205 = vmatpush.msra.mxu1 %v204_v52  ;;  %136 = vmatpush.msra.mxu0 %v1751_v15 }
  0x30   :  { %260 = vmatpush.msra.mxu2 %v1766_v32  ;;  %284 = vmatpush.msra.mxu3 %v1751_v15 }
  0x31   :  { %294 = vmatpush.msrb.mxu0 %v147_v19  ;;  %210 = vmatpush.msra.mxu1 %v209_v58 }
  0x32   :  { %262 = vmatpush.msra.mxu2 %v1778_v41  ;;  %142 = vmatmul.f32.vlgmr.msra.gmra.mxu0 %v141_v31 }
  0x33   :  { %297 = vmatpush.msrb.mxu0 %v152_v20  ;;  %215 = vmatpush.msra.mxu1 %v214_v1 }
  0x34   :  { %265 = vmatmul.f32.vlgmr.msra.gmra.mxu2 %v138_v33  ;;  %288 = vmatmul.f32.vlgmr.msra.gmra.mxu3 %v139_v49 }
  0x35   :  { %300 = vmatpush.msrb.mxu0 %v157_v21  ;;  %220 = vmatpush.msra.mxu1 %v219_v27  ;;  %v379_v21 = vld [vmem:[%s1923_s5] sm:$0xff] }
  0x37   :  { %303 = vmatpush.msrb.mxu0 %v162_v22  ;;  %225 = vmatpush.msra.mxu1 %v224_v34  ;;  %v1525_v22 = vmov 0  }
  0x38   :  { %227 = vmatmul.f32.vlgmr.msra.gmra.mxu1 %v1742_v0  ;;  %1350 = vset.pattern.permute.xlu0 %v1525_v22 }
  0x39   :  { %345 = vmatpush.msrb.mxu1 %v1596_v3  ;;  %306 = vmatpush.msrb.mxu0 %v167_v28  ;;  %v377_v3 = vld [vmem:[#allocation6] sm:$0xff] }
  0x3a   :  { %1351 = vset.pattern.permute.xlu1 %v1525_v22  ;;  %382 = vperm.xlu0 %1350, %v379_v21  }
  0x3b   :  { %346 = vmatpush.msrb.mxu1 %v1598_v4  ;;  %309 = vmatpush.msrb.mxu0 %v172_v29  ;;  %v403_v4 = vand.u32 4294901760, %v377_v3 }
  0x3c   :  { %1352 = vset.pattern.permute.xlu2 %v1525_v22 }
  0x3d   :  { %347 = vmatpush.msrb.mxu1 %v1600_v5  ;;  %312 = vmatpush.msrb.mxu0 %v177_v36  ;;  %v431_v5 = vsub.f32 %v377_v3, %v403_v4  ;;  %v548_v36 = vld [vmem:[%s1924_s6] sm:$0xf] }
  0x3e   :  { %404 = vmatpush.msrb.mxu2 %v403_v4 }
  0x3f   :  { %348 = vmatpush.msrb.mxu1 %v1602_v6  ;;  %315 = vmatpush.msrb.mxu0 %v182_v42  ;;  %v432_v6 = vand.u32 4294901760, %v431_v5 }
  0x41   :  { %349 = vmatpush.msrb.mxu1 %v1604_v8  ;;  %318 = vmatpush.msrb.mxu0 %v187_v50  ;;  %v433_v8 = vsub.f32 %v431_v5, %v432_v6  ;;  %v550_v50 = vld [vmem:[%s1926_s8] sm:$0xf] }
  0x42   :  { %553 = vperm.xlu0 %1350, %v548_v36  }
  0x43   :  { %350 = vmatpush.msrb.mxu1 %v1606_v9  ;;  %321 = vmatpush.msrb.mxu0 %v192_v55  ;;  %v434_v9 = vand.u32 4294901760, %v433_v8 }
  0x45   :  { %351 = vmatpush.msrb.mxu1 %v1608_v10  ;;  %324 = vmatpush.msrb.mxu0 %v197_v62  ;;  %v378_v10 = vld [vmem:[#allocation8] sm:$0xff] }
  0x46   :  { %435 = vmatpush.msrb.mxu3 %v434_v9  ;;  %v387_v13 = vsel %vm385_vm0, %v378_v10, 0 }
  0x47   :  { %352 = vmatpush.msrb.mxu1 %v1631_v17  ;;  %327 = vmatpush.msrb.mxu0 %v202_v7  ;;  %v407_v17 = vand.u32 4294901760, %v387_v13 }
  0x49   :  { %353 = vmatpush.msrb.mxu1 %v1644_v23  ;;  %330 = vmatpush.msrb.mxu0 %v207_v26  ;;  %v408_v20 = vsub.f32 %v387_v13, %v407_v17 }
  0x4b   :  { %354 = vmatpush.msrb.mxu1 %v1672_v35  ;;  %333 = vmatpush.msrb.mxu0 %v212_v38  ;;  %v409_v28 = vand.u32 4294901760, %v408_v20 }
  0x4d   :  { %355 = vmatpush.msrb.mxu1 %v1681_v39  ;;  %336 = vmatpush.msrb.mxu0 %v217_v47  ;;  %v549_v39 = vld [vmem:[%s1925_s7] sm:$0xf]  ;;  %v410_v42 = vsub.f32 %v408_v20, %v409_v28 }
  0x4e   :  { %560 = vperm.xlu1 %1351, %v549_v39  }
  0x4f   :  { %356 = vmatpush.msrb.mxu1 %v1694_v45  ;;  %339 = vmatpush.msrb.mxu0 %v222_v54 }
  0x50   :  { %341 = vmatmul.f32.vlgmr.msrb.gmra.mxu0 %v1742_v0 }
  0x51   :  { %357 = vmatpush.msrb.mxu1 %v1703_v48  ;;  %v411_v48 = vand.u32 4294901760, %v410_v42 }
  0x53   :  { %358 = vmatpush.msrb.mxu1 %v1720_v56 }
  0x55   :  { %359 = vmatpush.msrb.mxu1 %v1740_v63 }
  0x56   :  { %567 = vperm.xlu1 %1351, %v550_v50  }
  0x57   :  { %360 = vmatpush.msrb.mxu1 %v1751_v15 }
  0x58   :  { %362 = vmatmul.f32.vlgmr.msrb.gmra.mxu1 %v1742_v0 }
  0xac   :  { %v383_v62 = vpop.permute.xlu0 %382 }
  0xaf   :  { %v143_v12 = vpop.f32.mrf.mxu0 }
  0xb4   :  { %v554_v54 = vpop.permute.xlu0 %553 }
  0xb5   :  { %v228_v11 = vpop.f32.mrf.mxu1 }
  0xb6   :  { %v229_v14 = vadd.f32 %v228_v11, %v143_v12 }
  0xb7   :  { %v266_v16 = vpop.f32.mrf.mxu2  ;;  %v289_v19 = vpop.f32.mrf.mxu3 }
  0xb8   :  { %v267_v18 = vadd.f32 %v266_v16, %v229_v14 }
  0xba   :  { %v290_v23 = vadd.f32 %v289_v19, %v267_v18 }
  0xc0   :  { %v1868_v37 = vpop.permute.xlu1 %560 }
  0xc1   :  { %v563_v44 = vmul.f32 0.0, %v1868_v37 }
  0xc8   :  { %v1883_v9 = vpop.permute.xlu1 %567 }
  0xcd   :  { %v342_v24 = vpop.f32.mrf.mxu0 }
  0xce   :  { %v343_v29 = vadd.f32 %v342_v24, %v290_v23 }
  0xd5   :  { %v363_v35 = vpop.f32.mrf.mxu1 }
  0xd6   :  { %v364_v40 = vadd.f32 %v363_v35, %v343_v29 }
  0xd8   :  { %v376_v45 = vmul.f32 %v1353_v30, %v364_v40 }
  0xda   :  { %v405_v46 = vand.u32 4294901760, %v376_v45 }
  0xdc   :  { %406 = vmatpush.msrb.mxu2 %v405_v46  ;;  %v437_v51 = vsub.f32 %v376_v45, %v405_v46 }
  0xdd   :  { %412 = vmatmul.f32.vlgmr.msrb.gmra.mxu2 %v411_v48 }
  0xde   :  { %463 = vmatpush.msra.mxu2 %v431_v5  ;;  %v438_v55 = vand.u32 4294901760, %v437_v51 }
  0xe0   :  { %466 = vmatpush.msra.mxu2 %v437_v51  ;;  %v439_v56 = vsub.f32 %v437_v51, %v438_v55 }
  0xe2   :  { %515 = vmatpush.msrb.mxu2 %v432_v6  ;;  %v440_v57 = vand.u32 4294901760, %v439_v56 }
  0xe4   :  { %519 = vmatpush.msrb.mxu2 %v438_v55  ;;  %441 = vmatpush.msrb.mxu3 %v440_v57 }
  0xe5   :  { %443 = vmatmul.f32.vlgmr.msrb.gmra.mxu3 %v407_v17  ;;  %469 = vmatmul.f32.vlgmr.msra.gmra.mxu2 %v408_v20 }
  0xe6   :  { %488 = vmatpush.msra.mxu3 %v403_v4 }
  0xe8   :  { %490 = vmatpush.msra.mxu3 %v405_v46 }
  0xea   :  { %540 = vmatpush.msrb.mxu3 %v403_v4 }
  0xec   :  { %542 = vmatpush.msrb.mxu3 %v405_v46 }
  0xed   :  { %494 = vmatmul.f32.vlgmr.msra.gmra.mxu3 %v409_v28  ;;  %521 = vmatmul.f32.vlgmr.msrb.gmra.mxu2 %v407_v17 }
  0xf5   :  { %544 = vmatmul.f32.vlgmr.msrb.gmra.mxu3 %v407_v17 }
 0x160   :  { %v413_v59 = vpop.f32.mrf.mxu2 }
 0x161   :  { %v414_v0 = vadd.f32 %v413_v59, %v383_v62 }
 0x168   :  { %v444_v63 = vpop.f32.mrf.mxu3  ;;  %v470_v7 = vpop.f32.mrf.mxu2 }
 0x169   :  { %v445_v15 = vadd.f32 %v444_v63, %v414_v0 }
 0x16b   :  { %v471_v26 = vadd.f32 %v470_v7, %v445_v15 }
 0x170   :  { %v495_v25 = vpop.f32.mrf.mxu3  ;;  %v522_v33 = vpop.f32.mrf.mxu2 }
 0x171   :  { %v496_v32 = vadd.f32 %v495_v25, %v471_v26 }
 0x173   :  { %v523_v38 = vadd.f32 %v522_v33, %v496_v32 }
 0x178   :  { %v545_v41 = vpop.f32.mrf.mxu3 }
 0x179   :  { %v546_v43 = vadd.f32 %v545_v41, %v523_v38 }
 0x17b   :  { %v556_v47 = vperm.slane %v546_v43, 0  ;;  %v627_v49 = vperm.slane %v546_v43, 1  ;;  %v689_v52 = vperm.slane %v546_v43, 2  ;;  %v751_v53 = vperm.slane %v546_v43, 3 }
 0x17c   :  { %v813_v58 = vperm.slane %v546_v43, 4  ;;  %v875_v60 = vperm.slane %v546_v43, 5  ;;  %v937_v61 = vperm.slane %v546_v43, 6  ;;  %v999_v1 = vperm.slane %v546_v43, 7 }
 0x17d   :  { %v557_v2 = vmul.f32 %v556_v47, %v554_v54  ;;  %v628_v27 = vmul.f32 %v627_v49, %v554_v54  ;;  %v1871_v31 = vmul.f32 %v689_v52, %v554_v54  ;;  %v1873_v34 = vmul.f32 %v751_v53, %v554_v54 }
 0x17e   :  { %v1875_v3 = vmul.f32 %v813_v58, %v554_v54  ;;  %v1877_v4 = vmul.f32 %v875_v60, %v554_v54  ;;  %v1879_v5 = vmul.f32 %v937_v61, %v554_v54  ;;  %v1881_v6 = vmul.f32 %v999_v1, %v554_v54 }
 0x17f   :  { %v564_v8 = vadd.f32 %v563_v44, %v557_v2 }
 0x181   :  { %v570_v10 = vadd.f32 %v1883_v9, %v564_v8 }
 0x183   :  { %v1272_v11 = vmul.f32 -1.442695, %v570_v10 }
 0x185   :  { %1354 = vpow2.f32 %v1272_v11 }
 0x18b   :  { %v1355_v12 = vpop.eup %1354 }
 0x18c   :  { %v574_v13 = vadd.f32 1.0, %v1355_v12 }
 0x18e   :  { %1356 = vrcp.f32 %v574_v13  ;;  %v586_v18 = vand.u32 2147483648, %v574_v13  ;;  %v584_v20 = vand.u32 2147483647, %v574_v13  ;;  %vm580_vm2 = vweird.f32 %v574_v13 }
 0x190   :  { %v587_v22 = vor.u32 1.1754944e-38, %v586_v18  ;;  %vm585_vm4 = vcmp.eq.f32.partialorder %v584_v20, 8.507059e+37 }
 0x194   :  { %v1357_v14 = vpop.eup %1356 }
 0x195   :  { %v576_v16 = vmul.f32 %v1357_v14, %v574_v13  ;;  %vm581_vm1 = vweird.f32 %v1357_v14 }
 0x196   :  { %vm582_vm3 = vmor %vm580_vm2, %vm581_vm1  ;;  %vm1082_vm1 = vcmask 1040384  }
 0x197   :  { %v577_v17 = vsub.f32 1.0, %v576_v16 }
 0x199   :  { %v578_v19 = vmul.f32 %v1357_v14, %v577_v17 }
 0x19b   :  { %v579_v21 = vadd.f32 %v1357_v14, %v578_v19 }
 0x19d   :  { %v583_v23 = vsel %vm582_vm3, %v1357_v14, %v579_v21 }
 0x19e   :  { %v588_v24 = vsel %vm585_vm4, %v587_v22, %v583_v23 }
 0x19f   :  { %v590_v28 = vmul.f32 2.0, %v588_v24  ;;  %v592_v36 = vmul.f32 0.0, %v588_v24 }
 0x1a1   :  { %v1273_v29 = vadd.f32 -1.0, %v590_v28 }
 0x1a3   :  { %v594_v30 = vrot.slane %v1273_v29, 2 }
 0x1a5   :  { %v596_v35 = vmul.f32 %v594_v30, %v588_v24 }
 0x1a7   :  { %v598_v39 = vrot.slane %v596_v35, 7 }
 0x1a9   :  { %v600_v40 = vadd.f32 %v598_v39, %v592_v36 }
 0x1ab   :  { %v1274_v42 = vmul.f32 -2.0, %v600_v40 }
 0x1ad   :  { %v603_v45 = vmul.f32 1.442695, %v1274_v42 }
 0x1af   :  { %1358 = vpow2.f32 %v603_v45 }
 0x1b5   :  { %v1359_v46 = vpop.eup %1358 }
 0x1b6   :  { %v605_v48 = vadd.f32 1.0, %v1359_v46 }
 0x1b8   :  { %1360 = vrcp.f32 %v605_v48  ;;  %v617_v56 = vand.u32 2147483648, %v605_v48  ;;  %v615_v59 = vand.u32 2147483647, %v605_v48  ;;  %vm611_vm6 = vweird.f32 %v605_v48 }
 0x1ba   :  { %v618_v63 = vor.u32 1.1754944e-38, %v617_v56  ;;  %vm616_vm8 = vcmp.eq.f32.partialorder %v615_v59, 8.507059e+37 }
 0x1be   :  { %v1361_v50 = vpop.eup %1360 }
 0x1bf   :  { %v607_v51 = vmul.f32 %v1361_v50, %v605_v48  ;;  %vm612_vm5 = vweird.f32 %v1361_v50 }
 0x1c0   :  { %vm613_vm7 = vmor %vm611_vm6, %vm612_vm5 }
 0x1c1   :  { %v608_v55 = vsub.f32 1.0, %v607_v51 }
 0x1c3   :  { %v609_v57 = vmul.f32 %v1361_v50, %v608_v55 }
 0x1c5   :  { %v610_v62 = vadd.f32 %v1361_v50, %v609_v57 }
 0x1c7   :  { %v614_v0 = vsel %vm613_vm7, %v1361_v50, %v610_v62 }
 0x1c8   :  { %v619_v7 = vsel %vm616_vm8, %v618_v63, %v614_v0 }
 0x1c9   :  { %v621_v15 = vmul.f32 2.0, %v619_v7 }
 0x1cb   :  { %v1275_v25 = vadd.f32 -1.0, %v621_v15 }
 0x1cd   :  { %v624_v26 = vrot.slane %v1275_v25, 6 }
 0x1cf   :  { %v626_v32 = vmul.f32 %v624_v26, %v588_v24 }
 0x1d1   :  { %v629_v33 = vperm.slane %v626_v32, 3  ;;  %v1062_v51 = vrot.slane %v626_v32, 3 }
 0x1d3   :  { %v630_v38 = vmul.f32 %v629_v33, %v1868_v37 }
 0x1d5   :  { %v631_v41 = vadd.f32 %v630_v38, %v628_v27 }
 0x1d7   :  { %v632_v43 = vadd.f32 %v631_v41, %v1883_v9 }
 0x1d9   :  { %v1276_v44 = vmul.f32 -1.442695, %v632_v43 }
 0x1db   :  { %1362 = vpow2.f32 %v1276_v44 }
 0x1e1   :  { %v1363_v47 = vpop.eup %1362 }
 0x1e2   :  { %v636_v49 = vadd.f32 1.0, %v1363_v47 }
 0x1e4   :  { %1364 = vrcp.f32 %v636_v49  ;;  %v648_v58 = vand.u32 2147483648, %v636_v49  ;;  %v646_v61 = vand.u32 2147483647, %v636_v49  ;;  %vm642_vm10 = vweird.f32 %v636_v49 }
 0x1e6   :  { %v649_v2 = vor.u32 1.1754944e-38, %v648_v58  ;;  %vm647_vm12 = vcmp.eq.f32.partialorder %v646_v61, 8.507059e+37 }
 0x1ea   :  { %v1365_v52 = vpop.eup %1364 }
 0x1eb   :  { %v638_v53 = vmul.f32 %v1365_v52, %v636_v49  ;;  %vm643_vm9 = vweird.f32 %v1365_v52 }
 0x1ec   :  { %vm644_vm11 = vmor %vm642_vm10, %vm643_vm9  ;;  %vm1084_vm10 = vcmask 1041408  }
 0x1ed   :  { %v639_v54 = vsub.f32 1.0, %v638_v53 }
 0x1ef   :  { %v640_v60 = vmul.f32 %v1365_v52, %v639_v54 }
 0x1f1   :  { %v641_v1 = vadd.f32 %v1365_v52, %v640_v60 }
 0x1f3   :  { %v645_v8 = vsel %vm644_vm11, %v1365_v52, %v641_v1 }
 0x1f4   :  { %v650_v27 = vsel %vm647_vm12, %v649_v2, %v645_v8 }
 0x1f5   :  { %v652_v10 = vmul.f32 2.0, %v650_v27  ;;  %v654_v14 = vmul.f32 %v650_v27, %v600_v40 }
 0x1f7   :  { %v1277_v11 = vadd.f32 -1.0, %v652_v10 }
 0x1f9   :  { %v656_v12 = vrot.slane %v1277_v11, 2 }
 0x1fb   :  { %v658_v13 = vmul.f32 %v656_v12, %v650_v27 }
 0x1fd   :  { %v660_v16 = vrot.slane %v658_v13, 7 }
 0x1ff   :  { %v662_v17 = vadd.f32 %v660_v16, %v654_v14 }
 0x201   :  { %v1278_v18 = vmul.f32 -2.0, %v662_v17 }
 0x203   :  { %v665_v19 = vmul.f32 1.442695, %v1278_v18 }
 0x205   :  { %1366 = vpow2.f32 %v665_v19 }
 0x20b   :  { %v1367_v20 = vpop.eup %1366 }
 0x20c   :  { %v667_v21 = vadd.f32 1.0, %v1367_v20 }
 0x20e   :  { %1368 = vrcp.f32 %v667_v21  ;;  %v679_v28 = vand.u32 2147483648, %v667_v21  ;;  %v677_v30 = vand.u32 2147483647, %v667_v21  ;;  %vm673_vm14 = vweird.f32 %v667_v21 }
 0x210   :  { %v680_v36 = vor.u32 1.1754944e-38, %v679_v28  ;;  %vm678_vm0 = vcmp.eq.f32.partialorder %v677_v30, 8.507059e+37 }
 0x214   :  { %v1369_v22 = vpop.eup %1368 }
 0x215   :  { %v669_v23 = vmul.f32 %v1369_v22, %v667_v21  ;;  %vm674_vm13 = vweird.f32 %v1369_v22 }
 0x216   :  { %vm675_vm15 = vmor %vm673_vm14, %vm674_vm13 }
 0x217   :  { %v670_v24 = vsub.f32 1.0, %v669_v23 }
 0x219   :  { %v671_v29 = vmul.f32 %v1369_v22, %v670_v24 }
 0x21b   :  { %v672_v35 = vadd.f32 %v1369_v22, %v671_v29 }
 0x21d   :  { %v676_v39 = vsel %vm675_vm15, %v1369_v22, %v672_v35 }
 0x21e   :  { %v681_v40 = vsel %vm678_vm0, %v680_v36, %v676_v39 }
 0x21f   :  { %v683_v42 = vmul.f32 2.0, %v681_v40 }
 0x221   :  { %v1279_v45 = vadd.f32 -1.0, %v683_v42 }
 0x223   :  { %v686_v46 = vrot.slane %v1279_v45, 6 }
 0x225   :  { %v688_v48 = vmul.f32 %v686_v46, %v650_v27 }
 0x227   :  { %v691_v50 = vperm.slane %v688_v48, 3  ;;  %v1065_v55 = vrot.slane %v688_v48, 2 }
 0x229   :  { %v692_v56 = vmul.f32 %v691_v50, %v1868_v37  ;;  %v1083_v57 = vsel %vm1082_vm1, %v1062_v51, %v1065_v55 }
 0x22b   :  { %v693_v59 = vadd.f32 %v692_v56, %v1871_v31 }
 0x22d   :  { %v694_v62 = vadd.f32 %v693_v59, %v1883_v9 }
 0x22f   :  { %v1280_v63 = vmul.f32 -1.442695, %v694_v62 }
 0x231   :  { %1370 = vpow2.f32 %v1280_v63 }
 0x237   :  { %v1371_v0 = vpop.eup %1370 }
 0x238   :  { %v698_v7 = vadd.f32 1.0, %v1371_v0 }
 0x23a   :  { %1372 = vrcp.f32 %v698_v7  ;;  %v710_v33 = vand.u32 2147483648, %v698_v7  ;;  %v708_v32 = vand.u32 2147483647, %v698_v7  ;;  %vm704_vm3 = vweird.f32 %v698_v7 }
 0x23c   :  { %v711_v43 = vor.u32 1.1754944e-38, %v710_v33  ;;  %vm709_vm5 = vcmp.eq.f32.partialorder %v708_v32, 8.507059e+37 }
 0x240   :  { %v1373_v15 = vpop.eup %1372 }
 0x241   :  { %v700_v25 = vmul.f32 %v1373_v15, %v698_v7  ;;  %vm705_vm2 = vweird.f32 %v1373_v15 }
 0x242   :  { %vm706_vm4 = vmor %vm704_vm3, %vm705_vm2  ;;  %vm1086_vm3 = vcmask 1042432  }
 0x243   :  { %v701_v26 = vsub.f32 1.0, %v700_v25 }
 0x245   :  { %v702_v38 = vmul.f32 %v1373_v15, %v701_v26 }
 0x247   :  { %v703_v41 = vadd.f32 %v1373_v15, %v702_v38 }
 0x249   :  { %v707_v44 = vsel %vm706_vm4, %v1373_v15, %v703_v41 }
 0x24a   :  { %v712_v31 = vsel %vm709_vm5, %v711_v43, %v707_v44 }
 0x24b   :  { %v714_v47 = vmul.f32 2.0, %v712_v31  ;;  %v716_v54 = vmul.f32 %v712_v31, %v662_v17 }
 0x24d   :  { %v1281_v49 = vadd.f32 -1.0, %v714_v47 }
 0x24f   :  { %v718_v52 = vrot.slane %v1281_v49, 2 }
 0x251   :  { %v720_v53 = vmul.f32 %v718_v52, %v712_v31 }
 0x253   :  { %v722_v58 = vrot.slane %v720_v53, 7 }
 0x255   :  { %v724_v60 = vadd.f32 %v722_v58, %v716_v54 }
 0x257   :  { %v1282_v61 = vmul.f32 -2.0, %v724_v60 }
 0x259   :  { %v727_v1 = vmul.f32 1.442695, %v1282_v61 }
 0x25b   :  { %1374 = vpow2.f32 %v727_v1 }
 0x261   :  { %v1375_v2 = vpop.eup %1374 }
 0x262   :  { %v729_v8 = vadd.f32 1.0, %v1375_v2 }
 0x264   :  { %1376 = vrcp.f32 %v729_v8  ;;  %v741_v12 = vand.u32 2147483648, %v729_v8  ;;  %v739_v14 = vand.u32 2147483647, %v729_v8  ;;  %vm735_vm7 = vweird.f32 %v729_v8 }
 0x266   :  { %v742_v18 = vor.u32 1.1754944e-38, %v741_v12  ;;  %vm740_vm9 = vcmp.eq.f32.partialorder %v739_v14, 8.507059e+37 }
 0x26a   :  { %v1377_v27 = vpop.eup %1376 }
 0x26b   :  { %v731_v10 = vmul.f32 %v1377_v27, %v729_v8  ;;  %vm736_vm6 = vweird.f32 %v1377_v27 }
 0x26c   :  { %vm737_vm8 = vmor %vm735_vm7, %vm736_vm6 }
 0x26d   :  { %v732_v11 = vsub.f32 1.0, %v731_v10 }
 0x26f   :  { %v733_v13 = vmul.f32 %v1377_v27, %v732_v11 }
 0x271   :  { %v734_v16 = vadd.f32 %v1377_v27, %v733_v13 }
 0x273   :  { %v738_v17 = vsel %vm737_vm8, %v1377_v27, %v734_v16 }
 0x274   :  { %v743_v19 = vsel %vm740_vm9, %v742_v18, %v738_v17 }
 0x275   :  { %v745_v20 = vmul.f32 2.0, %v743_v19 }
 0x277   :  { %v1283_v21 = vadd.f32 -1.0, %v745_v20 }
 0x279   :  { %v748_v22 = vrot.slane %v1283_v21, 6 }
 0x27b   :  { %v750_v23 = vmul.f32 %v748_v22, %v712_v31 }
 0x27d   :  { %v753_v24 = vperm.slane %v750_v23, 3  ;;  %v1068_v28 = vrot.slane %v750_v23, 1 }
 0x27f   :  { %v754_v29 = vmul.f32 %v753_v24, %v1868_v37  ;;  %v1085_v30 = vsel %vm1084_vm10, %v1083_v57, %v1068_v28 }
 0x281   :  { %v755_v35 = vadd.f32 %v754_v29, %v1873_v34 }
 0x283   :  { %v756_v36 = vadd.f32 %v755_v35, %v1883_v9 }
 0x285   :  { %v1284_v39 = vmul.f32 -1.442695, %v756_v36 }
 0x287   :  { %1378 = vpow2.f32 %v1284_v39 }
 0x28d   :  { %v1379_v40 = vpop.eup %1378 }
 0x28e   :  { %v760_v42 = vadd.f32 1.0, %v1379_v40 }
 0x290   :  { %1380 = vrcp.f32 %v760_v42  ;;  %v772_v50 = vand.u32 2147483648, %v760_v42  ;;  %v770_v55 = vand.u32 2147483647, %v760_v42  ;;  %vm766_vm12 = vweird.f32 %v760_v42 }
 0x292   :  { %v773_v57 = vor.u32 1.1754944e-38, %v772_v50  ;;  %vm771_vm14 = vcmp.eq.f32.partialorder %v770_v55, 8.507059e+37 }
 0x296   :  { %v1381_v45 = vpop.eup %1380 }
 0x297   :  { %v762_v46 = vmul.f32 %v1381_v45, %v760_v42  ;;  %vm767_vm11 = vweird.f32 %v1381_v45 }
 0x298   :  { %vm768_vm13 = vmor %vm766_vm12, %vm767_vm11  ;;  %vm1088_vm12 = vcmask 1043456  }
 0x299   :  { %v763_v48 = vsub.f32 1.0, %v762_v46 }
 0x29b   :  { %v764_v51 = vmul.f32 %v1381_v45, %v763_v48 }
 0x29d   :  { %v765_v56 = vadd.f32 %v1381_v45, %v764_v51 }
 0x29f   :  { %v769_v59 = vsel %vm768_vm13, %v1381_v45, %v765_v56 }
 0x2a0   :  { %v774_v34 = vsel %vm771_vm14, %v773_v57, %v769_v59 }
 0x2a1   :  { %v776_v62 = vmul.f32 2.0, %v774_v34  ;;  %v778_v15 = vmul.f32 %v774_v34, %v724_v60 }
 0x2a3   :  { %v1285_v63 = vadd.f32 -1.0, %v776_v62 }
 0x2a5   :  { %v780_v0 = vrot.slane %v1285_v63, 2 }
 0x2a7   :  { %v782_v7 = vmul.f32 %v780_v0, %v774_v34 }
 0x2a9   :  { %v784_v25 = vrot.slane %v782_v7, 7 }
 0x2ab   :  { %v786_v26 = vadd.f32 %v784_v25, %v778_v15 }
 0x2ad   :  { %v1286_v33 = vmul.f32 -2.0, %v786_v26 }
 0x2af   :  { %v789_v38 = vmul.f32 1.442695, %v1286_v33 }
 0x2b1   :  { %1382 = vpow2.f32 %v789_v38 }
 0x2b7   :  { %v1383_v32 = vpop.eup %1382 }
 0x2b8   :  { %v791_v41 = vadd.f32 1.0, %v1383_v32 }
 0x2ba   :  { %1384 = vrcp.f32 %v791_v41  ;;  %v803_v47 = vand.u32 2147483648, %v791_v41  ;;  %v801_v52 = vand.u32 2147483647, %v791_v41  ;;  %vm797_vm0 = vweird.f32 %v791_v41 }
 0x2bc   :  { %v804_v54 = vor.u32 1.1754944e-38, %v803_v47  ;;  %vm802_vm2 = vcmp.eq.f32.partialorder %v801_v52, 8.507059e+37 }
 0x2c0   :  { %v1385_v43 = vpop.eup %1384 }
 0x2c1   :  { %v793_v44 = vmul.f32 %v1385_v43, %v791_v41  ;;  %vm798_vm15 = vweird.f32 %v1385_v43 }
 0x2c2   :  { %vm799_vm1 = vmor %vm797_vm0, %vm798_vm15 }
 0x2c3   :  { %v794_v31 = vsub.f32 1.0, %v793_v44 }
 0x2c5   :  { %v795_v49 = vmul.f32 %v1385_v43, %v794_v31 }
 0x2c7   :  { %v796_v53 = vadd.f32 %v1385_v43, %v795_v49 }
 0x2c9   :  { %v800_v58 = vsel %vm799_vm1, %v1385_v43, %v796_v53 }
 0x2ca   :  { %v805_v60 = vsel %vm802_vm2, %v804_v54, %v800_v58 }
 0x2cb   :  { %v807_v61 = vmul.f32 2.0, %v805_v60 }
 0x2cd   :  { %v1287_v1 = vadd.f32 -1.0, %v807_v61 }
 0x2cf   :  { %v810_v2 = vrot.slane %v1287_v1, 6 }
 0x2d1   :  { %v812_v8 = vmul.f32 %v810_v2, %v774_v34 }
 0x2d3   :  { %v815_v27 = vperm.slane %v812_v8, 3  ;;  %v1087_v10 = vsel %vm1086_vm3, %v1085_v30, %v812_v8 }
 0x2d5   :  { %v816_v11 = vmul.f32 %v815_v27, %v1868_v37 }
 0x2d7   :  { %v817_v12 = vadd.f32 %v816_v11, %v1875_v3 }
 0x2d9   :  { %v818_v13 = vadd.f32 %v817_v12, %v1883_v9 }
 0x2db   :  { %v1288_v14 = vmul.f32 -1.442695, %v818_v13 }
 0x2dd   :  { %1386 = vpow2.f32 %v1288_v14 }
 0x2e3   :  { %v1387_v16 = vpop.eup %1386 }
 0x2e4   :  { %v822_v18 = vadd.f32 1.0, %v1387_v16 }
 0x2e6   :  { %1388 = vrcp.f32 %v822_v18  ;;  %v834_v21 = vand.u32 2147483648, %v822_v18  ;;  %v832_v23 = vand.u32 2147483647, %v822_v18  ;;  %vm828_vm5 = vweird.f32 %v822_v18 }
 0x2e8   :  { %v835_v28 = vor.u32 1.1754944e-38, %v834_v21  ;;  %vm833_vm7 = vcmp.eq.f32.partialorder %v832_v23, 8.507059e+37 }
 0x2ec   :  { %v1389_v17 = vpop.eup %1388 }
 0x2ed   :  { %v824_v19 = vmul.f32 %v1389_v17, %v822_v18  ;;  %vm829_vm4 = vweird.f32 %v1389_v17 }
 0x2ee   :  { %vm830_vm6 = vmor %vm828_vm5, %vm829_vm4  ;;  %vm1090_vm5 = vcmask 1044480  }
 0x2ef   :  { %v825_v20 = vsub.f32 1.0, %v824_v19 }
 0x2f1   :  { %v826_v22 = vmul.f32 %v1389_v17, %v825_v20 }
 0x2f3   :  { %v827_v24 = vadd.f32 %v1389_v17, %v826_v22 }
 0x2f5   :  { %v831_v29 = vsel %vm830_vm6, %v1389_v17, %v827_v24 }
 0x2f6   :  { %v836_v3 = vsel %vm833_vm7, %v835_v28, %v831_v29 }
 0x2f7   :  { %v838_v30 = vmul.f32 2.0, %v836_v3  ;;  %v840_v40 = vmul.f32 %v836_v3, %v786_v26 }
 0x2f9   :  { %v1289_v35 = vadd.f32 -1.0, %v838_v30 }
 0x2fb   :  { %v842_v36 = vrot.slane %v1289_v35, 2 }
 0x2fd   :  { %v844_v39 = vmul.f32 %v842_v36, %v836_v3 }
 0x2ff   :  { %v846_v42 = vrot.slane %v844_v39, 7 }
 0x301   :  { %v848_v45 = vadd.f32 %v846_v42, %v840_v40 }
 0x303   :  { %v1290_v46 = vmul.f32 -2.0, %v848_v45 }
 0x305   :  { %v851_v48 = vmul.f32 1.442695, %v1290_v46 }
 0x307   :  { %1390 = vpow2.f32 %v851_v48 }
 0x30d   :  { %v1391_v50 = vpop.eup %1390 }
 0x30e   :  { %v853_v51 = vadd.f32 1.0, %v1391_v50 }
 0x310   :  { %1392 = vrcp.f32 %v853_v51  ;;  %v865_v59 = vand.u32 2147483648, %v853_v51  ;;  %v863_v62 = vand.u32 2147483647, %v853_v51  ;;  %vm859_vm9 = vweird.f32 %v853_v51 }
 0x312   :  { %v866_v0 = vor.u32 1.1754944e-38, %v865_v59  ;;  %vm864_vm11 = vcmp.eq.f32.partialorder %v863_v62, 8.507059e+37 }
 0x316   :  { %v1393_v55 = vpop.eup %1392 }
 0x317   :  { %v855_v56 = vmul.f32 %v1393_v55, %v853_v51  ;;  %vm860_vm8 = vweird.f32 %v1393_v55 }
 0x318   :  { %vm861_vm10 = vmor %vm859_vm9, %vm860_vm8 }
 0x319   :  { %v856_v57 = vsub.f32 1.0, %v855_v56 }
 0x31b   :  { %v857_v34 = vmul.f32 %v1393_v55, %v856_v57 }
 0x31d   :  { %v858_v63 = vadd.f32 %v1393_v55, %v857_v34 }
 0x31f   :  { %v862_v7 = vsel %vm861_vm10, %v1393_v55, %v858_v63 }
 0x320   :  { %v867_v15 = vsel %vm864_vm11, %v866_v0, %v862_v7 }
 0x321   :  { %v869_v25 = vmul.f32 2.0, %v867_v15 }
 0x323   :  { %v1291_v26 = vadd.f32 -1.0, %v869_v25 }
 0x325   :  { %v872_v33 = vrot.slane %v1291_v26, 6 }
 0x327   :  { %v874_v38 = vmul.f32 %v872_v33, %v836_v3 }
 0x329   :  { %v877_v32 = vperm.slane %v874_v38, 3  ;;  %v1071_v41 = vrot.slane %v874_v38, 7 }
 0x32b   :  { %v878_v43 = vmul.f32 %v877_v32, %v1868_v37  ;;  %v1089_v44 = vsel %vm1088_vm12, %v1087_v10, %v1071_v41 }
 0x32d   :  { %v879_v31 = vadd.f32 %v878_v43, %v1877_v4 }
 0x32f   :  { %v880_v47 = vadd.f32 %v879_v31, %v1883_v9 }
 0x331   :  { %v1292_v49 = vmul.f32 -1.442695, %v880_v47 }
 0x333   :  { %1394 = vpow2.f32 %v1292_v49 }
 0x339   :  { %v1395_v52 = vpop.eup %1394 }
 0x33a   :  { %v884_v53 = vadd.f32 1.0, %v1395_v52 }
 0x33c   :  { %1396 = vrcp.f32 %v884_v53  ;;  %v896_v61 = vand.u32 2147483648, %v884_v53  ;;  %v894_v2 = vand.u32 2147483647, %v884_v53  ;;  %vm890_vm14 = vweird.f32 %v884_v53 }
 0x33e   :  { %v897_v27 = vor.u32 1.1754944e-38, %v896_v61  ;;  %vm895_vm0 = vcmp.eq.f32.partialorder %v894_v2, 8.507059e+37 }
 0x342   :  { %v1397_v54 = vpop.eup %1396 }
 0x343   :  { %v886_v58 = vmul.f32 %v1397_v54, %v884_v53  ;;  %vm891_vm13 = vweird.f32 %v1397_v54 }
 0x344   :  { %vm892_vm15 = vmor %vm890_vm14, %vm891_vm13  ;;  %vm1092_vm14 = vcmask 1045504  }
 0x345   :  { %v887_v60 = vsub.f32 1.0, %v886_v58 }
 0x347   :  { %v888_v1 = vmul.f32 %v1397_v54, %v887_v60 }
 0x349   :  { %v889_v8 = vadd.f32 %v1397_v54, %v888_v1 }
 0x34b   :  { %v893_v10 = vsel %vm892_vm15, %v1397_v54, %v889_v8 }
 0x34c   :  { %v898_v4 = vsel %vm895_vm0, %v897_v27, %v893_v10 }
 0x34d   :  { %v900_v11 = vmul.f32 2.0, %v898_v4  ;;  %v902_v16 = vmul.f32 %v898_v4, %v848_v45 }
 0x34f   :  { %v1293_v12 = vadd.f32 -1.0, %v900_v11 }
 0x351   :  { %v904_v13 = vrot.slane %v1293_v12, 2 }
 0x353   :  { %v906_v14 = vmul.f32 %v904_v13, %v898_v4 }
 0x355   :  { %v908_v18 = vrot.slane %v906_v14, 7 }
 0x357   :  { %v910_v17 = vadd.f32 %v908_v18, %v902_v16 }
 0x359   :  { %v1294_v19 = vmul.f32 -2.0, %v910_v17 }
 0x35b   :  { %v913_v20 = vmul.f32 1.442695, %v1294_v19 }
 0x35d   :  { %1398 = vpow2.f32 %v913_v20 }
 0x363   :  { %v1399_v21 = vpop.eup %1398 }
 0x364   :  { %v915_v22 = vadd.f32 1.0, %v1399_v21 }
 0x366   :  { %1400 = vrcp.f32 %v915_v22  ;;  %v927_v29 = vand.u32 2147483648, %v915_v22  ;;  %v925_v30 = vand.u32 2147483647, %v915_v22  ;;  %vm921_vm2 = vweird.f32 %v915_v22 }
 0x368   :  { %v928_v36 = vor.u32 1.1754944e-38, %v927_v29  ;;  %vm926_vm4 = vcmp.eq.f32.partialorder %v925_v30, 8.507059e+37 }
 0x36c   :  { %v1401_v23 = vpop.eup %1400 }
 0x36d   :  { %v917_v24 = vmul.f32 %v1401_v23, %v915_v22  ;;  %vm922_vm1 = vweird.f32 %v1401_v23 }
 0x36e   :  { %vm923_vm3 = vmor %vm921_vm2, %vm922_vm1 }
 0x36f   :  { %v918_v28 = vsub.f32 1.0, %v917_v24 }
 0x371   :  { %v919_v3 = vmul.f32 %v1401_v23, %v918_v28 }
 0x373   :  { %v920_v35 = vadd.f32 %v1401_v23, %v919_v3 }
 0x375   :  { %v924_v39 = vsel %vm923_vm3, %v1401_v23, %v920_v35  ;;  %vm1103_vm3 = vcmask 64512  }
 0x376   :  { %v929_v40 = vsel %vm926_vm4, %v928_v36, %v924_v39 }
 0x377   :  { %v931_v42 = vmul.f32 2.0, %v929_v40 }
 0x379   :  { %v1295_v45 = vadd.f32 -1.0, %v931_v42 }
 0x37b   :  { %v934_v46 = vrot.slane %v1295_v45, 6 }
 0x37d   :  { %v936_v48 = vmul.f32 %v934_v46, %v898_v4 }
 0x37f   :  { %v939_v50 = vperm.slane %v936_v48, 3  ;;  %v1074_v51 = vrot.slane %v936_v48, 6 }
 0x381   :  { %v940_v55 = vmul.f32 %v939_v50, %v1868_v37  ;;  %v1091_v56 = vsel %vm1090_vm5, %v1089_v44, %v1074_v51 }
 0x383   :  { %v941_v57 = vadd.f32 %v940_v55, %v1879_v5 }
 0x385   :  { %v942_v59 = vadd.f32 %v941_v57, %v1883_v9 }
 0x387   :  { %v1296_v34 = vmul.f32 -1.442695, %v942_v59 }
 0x389   :  { %1402 = vpow2.f32 %v1296_v34 }
 0x38f   :  { %v1403_v62 = vpop.eup %1402 }
 0x390   :  { %v946_v63 = vadd.f32 1.0, %v1403_v62 }
 0x392   :  { %1404 = vrcp.f32 %v946_v63  ;;  %v958_v25 = vand.u32 2147483648, %v946_v63  ;;  %v956_v33 = vand.u32 2147483647, %v946_v63  ;;  %vm952_vm7 = vweird.f32 %v946_v63 }
 0x394   :  { %v959_v32 = vor.u32 1.1754944e-38, %v958_v25  ;;  %vm957_vm9 = vcmp.eq.f32.partialorder %v956_v33, 8.507059e+37 }
 0x398   :  { %v1405_v0 = vpop.eup %1404 }
 0x399   :  { %v948_v7 = vmul.f32 %v1405_v0, %v946_v63  ;;  %vm953_vm6 = vweird.f32 %v1405_v0 }
 0x39a   :  { %vm954_vm8 = vmor %vm952_vm7, %vm953_vm6 }
 0x39b   :  { %v949_v15 = vsub.f32 1.0, %v948_v7  ;;  %v1096_v7 = vld [vmem:[%s1927_s9] sm:$0xf]  ;;  %s1526_s9 = smov [#allocation9]  }
 0x39d   :  { %v950_v26 = vmul.f32 %v1405_v0, %v949_v15 }
 0x39f   :  { %v951_v38 = vadd.f32 %v1405_v0, %v950_v26  ;;  %v1105_v26 = vsel %vm1103_vm3, %v1096_v7, 0 }
 0x3a1   :  { %v955_v41 = vsel %vm954_vm8, %v1405_v0, %v951_v38  ;;  %vm1094_vm8 = vcmask 1046528  }
 0x3a2   :  { %v960_v5 = vsel %vm957_vm9, %v959_v32, %v955_v41 }
 0x3a3   :  { %v962_v43 = vmul.f32 2.0, %v960_v5  ;;  %v964_v49 = vmul.f32 %v960_v5, %v910_v17 }
 0x3a5   :  { %v1297_v44 = vadd.f32 -1.0, %v962_v43 }
 0x3a7   :  { %v966_v31 = vrot.slane %v1297_v44, 2 }
 0x3a9   :  { %v968_v47 = vmul.f32 %v966_v31, %v960_v5 }
 0x3ab   :  { %v970_v52 = vrot.slane %v968_v47, 7 }
 0x3ad   :  { %v972_v53 = vadd.f32 %v970_v52, %v964_v49  ;;  %v1097_v52 = vld [vmem:[%s1928_s10] sm:$0xf]  ;;  %s1259_s10 = sshll.u32 %s1526_s9, 4  ;;  %s1260_s10 = int_to_ptr.vmem [resolvable:$true] %s1259_s10 }
 0x3ae   :  { %1100 = vperm.xlu2 %1352, %v1097_v52  }
 0x3af   :  { %v1298_v54 = vmul.f32 -2.0, %v972_v53 }
 0x3b1   :  { %v975_v58 = vmul.f32 1.442695, %v1298_v54 }
 0x3b3   :  { %1406 = vpow2.f32 %v975_v58 }
 0x3b9   :  { %v1407_v60 = vpop.eup %1406 }
 0x3ba   :  { %v977_v61 = vadd.f32 1.0, %v1407_v60 }
 0x3bc   :  { %1408 = vrcp.f32 %v977_v61  ;;  %v989_v27 = vand.u32 2147483648, %v977_v61  ;;  %v987_v4 = vand.u32 2147483647, %v977_v61  ;;  %vm983_vm11 = vweird.f32 %v977_v61 }
 0x3be   :  { %v990_v12 = vor.u32 1.1754944e-38, %v989_v27  ;;  %vm988_vm13 = vcmp.eq.f32.partialorder %v987_v4, 8.507059e+37 }
 0x3c2   :  { %v1409_v1 = vpop.eup %1408 }
 0x3c3   :  { %v979_v2 = vmul.f32 %v1409_v1, %v977_v61  ;;  %vm984_vm10 = vweird.f32 %v1409_v1 }
 0x3c4   :  { %vm985_vm12 = vmor %vm983_vm11, %vm984_vm10 }
 0x3c5   :  { %v980_v8 = vsub.f32 1.0, %v979_v2 }
 0x3c7   :  { %v981_v10 = vmul.f32 %v1409_v1, %v980_v8 }
 0x3c9   :  { %v982_v11 = vadd.f32 %v1409_v1, %v981_v10 }
 0x3cb   :  { %v986_v13 = vsel %vm985_vm12, %v1409_v1, %v982_v11 }
 0x3cc   :  { %v991_v14 = vsel %vm988_vm13, %v990_v12, %v986_v13 }
 0x3cd   :  { %v993_v16 = vmul.f32 2.0, %v991_v14 }
 0x3cf   :  { %v1299_v18 = vadd.f32 -1.0, %v993_v16 }
 0x3d1   :  { %v996_v17 = vrot.slane %v1299_v18, 6 }
 0x3d3   :  { %v998_v19 = vmul.f32 %v996_v17, %v960_v5  ;;  %v1124_v5 = vand.u32 4294901760, %v1105_v26 }
 0x3d5   :  { %v1001_v20 = vperm.slane %v998_v19, 3  ;;  %v1077_v21 = vrot.slane %v998_v19, 5  ;;  %v1125_v47 = vsub.f32 %v1105_v26, %v1124_v5 }
 0x3d7   :  { %v1002_v22 = vmul.f32 %v1001_v20, %v1868_v37  ;;  %v1904_v23 = vsel %vm1092_vm14, %v1091_v56, %v1077_v21  ;;  %v1126_v58 = vand.u32 4294901760, %v1125_v47 }
 0x3d9   :  { %v1003_v24 = vadd.f32 %v1002_v22, %v1881_v6  ;;  %v1127_v1 = vsub.f32 %v1125_v47, %v1126_v58 }
 0x3db   :  { %v1004_v28 = vadd.f32 %v1003_v24, %v1883_v9  ;;  %v1128_v27 = vand.u32 4294901760, %v1127_v1 }
 0x3dd   :  { %v1300_v29 = vmul.f32 -1.442695, %v1004_v28 }
 0x3df   :  { %1410 = vpow2.f32 %v1300_v29 }
 0x3e5   :  { %v1411_v3 = vpop.eup %1410 }
 0x3e6   :  { %v1008_v30 = vadd.f32 1.0, %v1411_v3 }
 0x3e8   :  { %1412 = vrcp.f32 %v1008_v30  ;;  %v1020_v40 = vand.u32 2147483648, %v1008_v30  ;;  %v1018_v45 = vand.u32 2147483647, %v1008_v30  ;;  %vm1014_vm0 = vweird.f32 %v1008_v30 }
 0x3ea   :  { %v1021_v37 = vor.u32 1.1754944e-38, %v1020_v40  ;;  %vm1019_vm2 = vcmp.eq.f32.partialorder %v1018_v45, 8.507059e+37 }
 0x3ee   :  { %v1413_v35 = vpop.eup %1412 }
 0x3ef   :  { %v1010_v36 = vmul.f32 %v1413_v35, %v1008_v30  ;;  %vm1015_vm15 = vweird.f32 %v1413_v35 }
 0x3f0   :  { %vm1016_vm1 = vmor %vm1014_vm0, %vm1015_vm15 }
 0x3f1   :  { %v1011_v39 = vsub.f32 1.0, %v1010_v36 }
 0x3f3   :  { %v1012_v42 = vmul.f32 %v1413_v35, %v1011_v39 }
 0x3f5   :  { %v1013_v46 = vadd.f32 %v1413_v35, %v1012_v42 }
 0x3f7   :  { %v1017_v48 = vsel %vm1016_vm1, %v1413_v35, %v1013_v46 }
 0x3f8   :  { %v1022_v6 = vsel %vm1019_vm2, %v1021_v37, %v1017_v48 }
 0x3f9   :  { %v1024_v9 = vmul.f32 2.0, %v1022_v6  ;;  %v1026_v56 = vmul.f32 %v1022_v6, %v972_v53 }
 0x3fb   :  { %v1301_v50 = vadd.f32 -1.0, %v1024_v9 }
 0x3fd   :  { %v1028_v51 = vrot.slane %v1301_v50, 2 }
 0x3ff   :  { %v1030_v55 = vmul.f32 %v1028_v51, %v1022_v6 }
 0x401   :  { %v1032_v57 = vrot.slane %v1030_v55, 7 }
 0x403   :  { %v1034_v59 = vadd.f32 %v1032_v57, %v1026_v56 }
 0x405   :  { %v1302_v34 = vmul.f32 -2.0, %v1034_v59 }
 0x407   :  { %v1037_v62 = vmul.f32 1.442695, %v1302_v34 }
 0x408   :  { %v1101_v14 = vpop.permute.xlu2 %1100 }
 0x409   :  { %1414 = vpow2.f32 %v1037_v62 }
 0x40f   :  { %v1415_v63 = vpop.eup %1414 }
 0x410   :  { %v1039_v0 = vadd.f32 1.0, %v1415_v63 }
 0x412   :  { %1416 = vrcp.f32 %v1039_v0  ;;  %v1051_v38 = vand.u32 2147483648, %v1039_v0  ;;  %v1049_v41 = vand.u32 2147483647, %v1039_v0  ;;  %vm1045_vm5 = vweird.f32 %v1039_v0 }
 0x414   :  { %v1052_v44 = vor.u32 1.1754944e-38, %v1051_v38  ;;  %vm1050_vm7 = vcmp.eq.f32.partialorder %v1049_v41, 8.507059e+37 }
 0x418   :  { %v1417_v15 = vpop.eup %1416 }
 0x419   :  { %v1041_v25 = vmul.f32 %v1417_v15, %v1039_v0  ;;  %vm1046_vm4 = vweird.f32 %v1417_v15 }
 0x41a   :  { %vm1047_vm6 = vmor %vm1045_vm5, %vm1046_vm4 }
 0x41b   :  { %v1042_v33 = vsub.f32 1.0, %v1041_v25 }
 0x41d   :  { %v1043_v32 = vmul.f32 %v1417_v15, %v1042_v33 }
 0x41f   :  { %v1044_v43 = vadd.f32 %v1417_v15, %v1043_v32 }
 0x421   :  { %v1048_v31 = vsel %vm1047_vm6, %v1417_v15, %v1044_v43 }
 0x422   :  { %v1053_v49 = vsel %vm1050_vm7, %v1052_v44, %v1048_v31 }
 0x423   :  { %v1055_v53 = vmul.f32 2.0, %v1053_v49 }
 0x425   :  { %v1303_v54 = vadd.f32 -1.0, %v1055_v53 }
 0x427   :  { %v1058_v60 = vrot.slane %v1303_v54, 6 }
 0x429   :  { %v1060_v61 = vmul.f32 %v1058_v60, %v1022_v6 }
 0x42b   :  { %v1080_v2 = vrot.slane %v1060_v61, 4 }
 0x42d   :  { %v1095_v8 = vsel %vm1094_vm8, %v1904_v23, %v1080_v2 }
 0x42e   :  { %v1122_v10 = vand.u32 4294901760, %v1095_v8 }
 0x430   :  { %1123 = vmatpush.msra.mxu2 %v1122_v10  ;;  %1199 = vmatpush.msra.mxu1 %v1122_v10  ;;  %v1149_v4 = vsub.f32 %v1095_v8, %v1122_v10 }
 0x431   :  { %1129 = vmatmul.f32.vlgmr.msra.gmra.mxu2 %v1128_v27  ;;  %1203 = vmatmul.f32.vlgmr.msra.gmra.mxu1 %v1126_v58 }
 0x432   :  { %1176 = vmatpush.msra.mxu0 %v1149_v4  ;;  %v1150_v11 = vand.u32 4294901760, %v1149_v4 }
 0x433   :  { %1179 = vmatmul.f32.vlgmr.msra.gmra.mxu0 %v1125_v47 }
 0x434   :  { %1225 = vmatpush.msrb.mxu2 %v1150_v11  ;;  %v1151_v12 = vsub.f32 %v1149_v4, %v1150_v11 }
 0x436   :  { %v1152_v13 = vand.u32 4294901760, %v1151_v12 }
 0x438   :  { %1153 = vmatpush.msra.mxu3 %v1152_v13 }
 0x439   :  { %1227 = vmatmul.f32.vlgmr.msrb.gmra.mxu2 %v1124_v5  ;;  %1155 = vmatmul.f32.vlgmr.msra.gmra.mxu3 %v1124_v5 }
 0x43a   :  { %1247 = vmatpush.msrb.mxu3 %v1122_v10 }
 0x441   :  { %1249 = vmatmul.f32.vlgmr.msrb.gmra.mxu3 %v1124_v5 }
 0x4ae   :  { %v1204_v21 = vpop.f32.mrf.mxu1 }
 0x4b0   :  { %v1180_v19 = vpop.f32.mrf.mxu0 }
 0x4b4   :  { %v1130_v16 = vpop.f32.mrf.mxu2 }
 0x4b5   :  { %v1131_v18 = vadd.f32 %v1130_v16, %v1101_v14 }
 0x4bc   :  { %v1156_v17 = vpop.f32.mrf.mxu3  ;;  %v1228_v23 = vpop.f32.mrf.mxu2 }
 0x4bd   :  { %v1157_v20 = vadd.f32 %v1156_v17, %v1131_v18 }
 0x4bf   :  { %v1181_v22 = vadd.f32 %v1180_v19, %v1157_v20 }
 0x4c1   :  { %v1205_v24 = vadd.f32 %v1204_v21, %v1181_v22 }
 0x4c3   :  { %v1229_v28 = vadd.f32 %v1228_v23, %v1205_v24 }
 0x4c4   :  { %v1250_v29 = vpop.f32.mrf.mxu3 }
 0x4c5   :  { %v1251_v3 = vadd.f32 %v1250_v29, %v1229_v28 }
 0x4c7   :  { %1253 = vst [vmem:[#allocation9] sm:$0xf] %v1251_v3 }
 0x4c8   :  { %1264 = dma.vmem_to_hbm [thread:$0]  %s1260_s10, 64, %s1262_s24, [#allocation5]  }
 0x4c9   :  { %1518 = dma.done.wait [#allocation5], 64  }
 0x4ca   :  { %1519 = vsyncadd [#allocation5], 4294967232 }
 0x4cb   :  { %1269 = vsyncpa [#allocation4], 1 }
 0x4cc   :  { %1270 = vsyncpa [#allocation7], 1 }
 0x4cd   :  { %1271 = vsyncpa [#allocation5], 1 }

</bundles_post_ra>
